<compile_context>
chip_gen: v7x
topology: tpu7x:2x2x1
jax: 0.10.0
libtpu: 0.0.40
codegen_flags: <defaults>
</compile_context>

<pallas_src>
import jax
import jax.numpy as jnp
from jax import lax
from jax.experimental import pallas as pl
from jax.experimental.pallas import tpu as pltpu


def capsule_kernel(xf_ref, lvt_ref, wbd_ref, attw_ref, b_ref, o_ref):
    # xf_ref:   (TB*I, A)      bf16  batch block of x, flattened over (b, i)
    # lvt_ref:  (A, O)         bf16  labelsVec^T
    # wbd_ref:  (O*I*A, O*OA)  bf16  block-diagonal fused vote/route weights,
    #                                rows ordered (o, i, a), cols (o', k)
    # attw_ref: (I, O)         f32
    # b_ref:    (1, O*OA)      f32   biases flattened (o, k)
    # o_ref:    (TB, O*OA)     f32   lane-dense output block
    I, O = attw_ref.shape
    A = xf_ref.shape[1]
    TB, OOA = o_ref.shape
    OA = OOA // O

    xf = xf_ref[...]                                           # (TB*I, A) bf16

    # --- attention logits on the MXU: x @ labelsVec^T (bf16 in, f32 acc) ---
    att = jnp.dot(xf, lvt_ref[...], preferred_element_type=jnp.float32)  # (TB*I, O)

    # F.normalize(att, dim=-1) with eps=1e-12:  att * rsqrt(max(|att|^2, eps^2))
    nsq_a = jnp.sum(att * att, axis=-1, keepdims=True)
    att = att * lax.rsqrt(jnp.maximum(nsq_a, 1e-24))

    # softmax over output_dim (EUP exp + approximate reciprocal)
    att = att - jnp.max(att, axis=-1, keepdims=True)
    e = jnp.exp(att)
    att = e * pl.reciprocal(jnp.sum(e, axis=-1, keepdims=True), approx=True)

    # att * attW + 1.0   (attW broadcasts over the batch block)
    att3 = att.reshape(TB, I, O)
    attn3 = att3 * attw_ref[...][None, :, :] + 1.0             # (TB, I, O) f32

    # --- fused votes + attention-weighted reduction over input capsules ---
    # wx[b, o*I*A + i*A + a] = attn[b,i,o] * x[b,i,a]; one MXU contraction with
    # the block-diagonal weight yields s[b, o*OA + k] directly
    # (K = O*I*A, N = O*OA lane-dense — replaces O matmuls with N = OA).
    x3 = xf.astype(jnp.float32).reshape(TB, I, A)              # (TB, I, A)
    wx = jnp.concatenate(
        [(attn3[:, :, o:o + 1] * x3).reshape(TB, I * A) for o in range(O)],
        axis=-1,
    ).astype(jnp.bfloat16)                                     # (TB, O*I*A)
    s = jnp.dot(wx, wbd_ref[...], preferred_element_type=jnp.float32) + b_ref[...]

    # _squash along the output_dim axis:  v = s * |s| / (1 + |s|^2)
    # (|s| taken over the O column groups, per (b, k)).
    nsq = None
    for o in range(O):                                         # O small & static
        so = s[:, o * OA:(o + 1) * OA]
        nsq = so * so if nsq is None else nsq + so * so        # (TB, OA)
    scale = jnp.sqrt(nsq) * pl.reciprocal(1.0 + nsq, approx=True)
    # NOTE: reference divides by the norm with no epsilon (NaN at exactly zero
    # norm); this rewrite returns 0 there instead — otherwise identical.
    o_ref[...] = s * jnp.concatenate([scale] * O, axis=-1)


def prepare_capsule_params(labels_vec, weights, biases, attW):
    """One-time parameter re-layout; do NOT call per forward step."""
    I, A, OOA = weights.shape
    O, OA = biases.shape
    assert OOA == O * OA and labels_vec.shape == (O, A) and attW.shape == (I, O)

    lvt = labels_vec.T.astype(jnp.bfloat16)                    # (A, O)
    w4 = weights.reshape(I, A, O, OA)
    eye = jnp.eye(O, dtype=weights.dtype)
    # Wbd[(o, i, a), (o', k)] = W[i, a, o*OA + k] * (o == o')
    wbd = jnp.einsum('iaok,op->oiapk', w4, eye)
    wbd = wbd.reshape(O * I * A, O * OA).astype(jnp.bfloat16)
    b_flat = biases.reshape(1, O * OA).astype(jnp.float32)
    return lvt, wbd, b_flat, attW.astype(jnp.float32)


def _make_call(b_pad, block_b, I, A, O, OA, single_buffer):
    OIA = O * I * A
    OOA = O * OA

    def inv_spec(shape):
        # Grid-invariant operands: constant index_map; single-buffer them to
        # halve their resident VMEM footprint (matters for big capsule configs,
        # esp. v7x's 64 MiB VMEM / 32 MiB scoped default and v5e's 16 MiB).
        if single_buffer:
            return pl.BlockSpec(shape, lambda b: (0, 0),
                                pipeline_mode=pl.Buffered(1))
        return pl.BlockSpec(shape, lambda b: (0, 0))

    return pl.pallas_call(
        capsule_kernel,
        out_shape=jax.ShapeDtypeStruct((b_pad, OOA), jnp.float32),
        grid_spec=pltpu.PrefetchScalarGridSpec(
            num_scalar_prefetch=0,
            grid=(b_pad // block_b,),
            in_specs=[
                pl.BlockSpec((block_b * I, A), lambda b: (b, 0)),   # x (streamed)
                inv_spec((A, O)),                                   # labelsVec^T
                inv_spec((OIA, OOA)),                               # fused weights
                inv_spec((I, O)),                                   # attW
                inv_spec((1, OOA)),                                 # biases
            ],
            out_specs=pl.BlockSpec((block_b, OOA), lambda b: (b, 0)),
        ),
        compiler_params=pltpu.CompilerParams(
            dimension_semantics=("parallel",)),
    )


def capsule_forward(x, params, *, block_b=None, max_block_b=256):
    """CapsuleLayer.forward.  `params` comes from prepare_capsule_params."""
    lvt, wbd, b_flat, attw = params
    B, I, A = x.shape
    O = attw.shape[1]
    OOA = b_flat.shape[1]
    OA = OOA // O

    # Block policy: several grid steps for large B (DMA/compute overlap +
    # megacore sharding on v7x); the whole batch in one step only when B is
    # already small.  VMEM per step stays tiny (x block + output block), so no
    # explicit vmem_limit_bytes is needed at these capsule sizes.
    if block_b is None:
        block_b = B if B <= max_block_b else max_block_b
    assert block_b == B or block_b % 8 == 0, "split batch blocks must be 8-aligned"

    n_blk = pl.cdiv(B, block_b)
    b_pad = n_blk * block_b
    xf = x.reshape(B * I, A).astype(jnp.bfloat16)      # free flatten in wrapper
    if b_pad != B:
        # Zero rows are squash-safe (no NaN) and are sliced off below.
        xf = jnp.pad(xf, ((0, (b_pad - B) * I), (0, 0)))

    args = (xf, lvt, wbd, attw, b_flat)
    try:
        out_flat = _make_call(b_pad, block_b, I, A, O, OA, True)(*args)
        out_flat.block_until_ready()
    except Exception:
        # pipeline_mode=pl.Buffered(1) unsupported on this jax version — fall
        # back to default double-buffering of the (small) invariant operands.
        out_flat = _make_call(b_pad, block_b, I, A, O, OA, False)(*args)

    return out_flat[:B].reshape(B, 1, O, OA)


def capsule_ref(x, labels_vec, weights, biases, attW):
    """Pure-JAX f32 reference mirroring the PyTorch forward exactly."""
    B, I, A = x.shape
    O, OA = biases.shape
    att = jnp.matmul(x, labels_vec.T)                              # (B, I, O)
    nrm = jnp.sqrt(jnp.sum(att * att, axis=-1, keepdims=True))
    att = att / jnp.maximum(nrm, 1e-12)                            # F.normalize
    votes = jnp.sum(x[..., None] * weights, axis=2)                # (B, I, O*OA)
    votes_r = votes.reshape(B, I, O, OA)
    att = jax.nn.softmax(att, axis=-1)
    att = att * attW + 1.0
    pre = att[..., None] * votes_r
    s = jnp.sum(pre, axis=1, keepdims=True) + biases               # (B, 1, O, OA)
    norm = jnp.sqrt(jnp.sum(s * s, axis=2, keepdims=True))
    nsq = norm * norm
    return s / norm * (nsq / (1.0 + nsq))


if __name__ == "__main__":
    # Small shapes consistent with the module: batch=2, input_dim=8,
    # input_atoms=16, output_dim=4, output_atoms=8.
    B, I, A, O, OA = 2, 8, 16, 4, 8
    key = jax.random.PRNGKey(0)
    kx, kl, kw, kb, ka, kab = jax.random.split(key, 6)

    x = jax.random.normal(kx, (B, I, A), dtype=jnp.float32)
    labels_vec = jax.random.normal(kl, (O, A), dtype=jnp.float32)
    weights = jax.random.normal(kw, (I, A, O * OA), dtype=jnp.float32)   # torch.randn
    biases = jax.random.normal(kb, (O, OA), dtype=jnp.float32)
    attW = jax.random.normal(ka, (I, O), dtype=jnp.float32)
    _attB = jax.random.normal(kab, (I, O), dtype=jnp.float32)  # unused in forward (matches torch)

    params = prepare_capsule_params(labels_vec, weights, biases, attW)  # one-time
    out = jax.block_until_ready(capsule_forward(x, params))
    ref = capsule_ref(x, labels_vec, weights, biases, attW)

    assert out.shape == (B, 1, O, OA), out.shape
    # bf16 MXU operands with f32 accumulation => loosened tolerance vs f32 ref.
    assert jnp.allclose(out, ref, rtol=5e-2, atol=5e-2), \
        "mismatch vs pure-JAX reference"
    print("KERNEL_OK")
</pallas_src>

<mosaic_0001>
module attributes {stable_mosaic.version = 11 : i64} {
  func.func @capsule_kernel(%arg0: i32, %arg1: memref<16x16xbf16, #tpu.memory_space<vmem>>, %arg2: memref<16x4xbf16, #tpu.memory_space<vmem>>, %arg3: memref<512x32xbf16, #tpu.memory_space<vmem>>, %arg4: memref<8x4xf32, #tpu.memory_space<vmem>>, %arg5: memref<1x32xf32, #tpu.memory_space<vmem>>, %arg6: memref<2x32xf32, #tpu.memory_space<vmem>>) attributes {dimension_semantics = [#tpu.dimension_semantics<parallel>], iteration_bounds = array<i64: 1>, scalar_prefetch = 0 : i64, scratch_operands = 0 : i64, tpu.core_type = #tpu.core_type<tc>, window_params = [{transform_indices = @transform_0, window_bounds = array<i64: 16, 16>}, {pipeline_mode = #tpu.pipeline_mode<synchronous>, transform_indices = @transform_1, window_bounds = array<i64: 16, 4>}, {pipeline_mode = #tpu.pipeline_mode<synchronous>, transform_indices = @transform_2, window_bounds = array<i64: 512, 32>}, {pipeline_mode = #tpu.pipeline_mode<synchronous>, transform_indices = @transform_3, window_bounds = array<i64: 8, 4>}, {pipeline_mode = #tpu.pipeline_mode<synchronous>, transform_indices = @transform_4, window_bounds = array<i64: 1, 32>}, {transform_indices = @transform_5, window_bounds = array<i64: 2, 32>}]} {
    %c0 = arith.constant 0 : index
    %c0_0 = arith.constant 0 : index
    %0 = vector.load %arg1[%c0, %c0_0] : memref<16x16xbf16, #tpu.memory_space<vmem>>, vector<16x16xbf16>
    %c0_1 = arith.constant 0 : index
    %c0_2 = arith.constant 0 : index
    %1 = vector.load %arg2[%c0_1, %c0_2] : memref<16x4xbf16, #tpu.memory_space<vmem>>, vector<16x4xbf16>
    %cst = arith.constant dense<0.000000e+00> : vector<16x4xf32>
    %2 = tpu.matmul %0, %1, %cst {dimension_numbers = #tpu.dot_dimension_numbers<[1], [0], [0], [1], [0, 0, 1, 1], [], []>} : vector<16x16xbf16>, vector<16x4xbf16>, vector<16x4xf32> -> vector<16x4xf32>
    %3 = arith.mulf %2, %2 : vector<16x4xf32>
    %cst_3 = arith.constant dense<0.000000e+00> : vector<16xf32>
    %4 = vector.multi_reduction <add>, %3, %cst_3 [1] : vector<16x4xf32> to vector<16xf32>
    %5 = vector.shape_cast %4 : vector<16xf32> to vector<16x1xf32>
    %cst_4 = arith.constant 1.000000e-24 : f32
    %6 = vector.broadcast %cst_4 : f32 to vector<16x1xf32>
    %7 = arith.maximumf %5, %6 : vector<16x1xf32>
    %8 = math.rsqrt %7 : vector<16x1xf32>
    %9 = vector.broadcast %8 : vector<16x1xf32> to vector<16x4xf32>
    %10 = arith.mulf %2, %9 : vector<16x4xf32>
    %cst_5 = arith.constant dense<0xFF800000> : vector<16xf32>
    %11 = vector.multi_reduction <maximumf>, %10, %cst_5 [1] : vector<16x4xf32> to vector<16xf32>
    %12 = vector.shape_cast %11 : vector<16xf32> to vector<16x1xf32>
    %13 = vector.broadcast %12 : vector<16x1xf32> to vector<16x4xf32>
    %14 = arith.subf %10, %13 : vector<16x4xf32>
    %15 = math.exp %14 : vector<16x4xf32>
    %cst_6 = arith.constant dense<0.000000e+00> : vector<16xf32>
    %16 = vector.multi_reduction <add>, %15, %cst_6 [1] : vector<16x4xf32> to vector<16xf32>
    %17 = vector.shape_cast %16 : vector<16xf32> to vector<16x1xf32>
    %18 = tpu.reciprocal %17 {approx = true} : vector<16x1xf32> -> vector<16x1xf32>
    %19 = vector.broadcast %18 : vector<16x1xf32> to vector<16x4xf32>
    %20 = arith.mulf %15, %19 : vector<16x4xf32>
    %21 = vector.shape_cast %20 : vector<16x4xf32> to vector<2x8x4xf32>
    %c0_7 = arith.constant 0 : index
    %c0_8 = arith.constant 0 : index
    %22 = vector.load %arg4[%c0_7, %c0_8] : memref<8x4xf32, #tpu.memory_space<vmem>>, vector<8x4xf32>
    %23 = vector.shape_cast %22 : vector<8x4xf32> to vector<1x8x4xf32>
    %24 = vector.broadcast %23 : vector<1x8x4xf32> to vector<2x8x4xf32>
    %25 = arith.mulf %21, %24 : vector<2x8x4xf32>
    %cst_9 = arith.constant 1.000000e+00 : f32
    %26 = vector.broadcast %cst_9 : f32 to vector<2x8x4xf32>
    %27 = arith.addf %25, %26 : vector<2x8x4xf32>
    %28 = arith.extf %0 : vector<16x16xbf16> to vector<16x16xf32>
    %29 = vector.shape_cast %28 : vector<16x16xf32> to vector<2x8x16xf32>
    %30 = vector.extract_strided_slice %27 {offsets = [0, 0, 0], sizes = [2, 8, 1], strides = [1, 1, 1]} : vector<2x8x4xf32> to vector<2x8x1xf32>
    %31 = vector.broadcast %30 : vector<2x8x1xf32> to vector<2x8x16xf32>
    %32 = arith.mulf %31, %29 : vector<2x8x16xf32>
    %33 = vector.shape_cast %32 : vector<2x8x16xf32> to vector<2x128xf32>
    %34 = vector.extract_strided_slice %27 {offsets = [0, 0, 1], sizes = [2, 8, 1], strides = [1, 1, 1]} : vector<2x8x4xf32> to vector<2x8x1xf32>
    %35 = vector.broadcast %34 : vector<2x8x1xf32> to vector<2x8x16xf32>
    %36 = arith.mulf %35, %29 : vector<2x8x16xf32>
    %37 = vector.shape_cast %36 : vector<2x8x16xf32> to vector<2x128xf32>
    %38 = vector.extract_strided_slice %27 {offsets = [0, 0, 2], sizes = [2, 8, 1], strides = [1, 1, 1]} : vector<2x8x4xf32> to vector<2x8x1xf32>
    %39 = vector.broadcast %38 : vector<2x8x1xf32> to vector<2x8x16xf32>
    %40 = arith.mulf %39, %29 : vector<2x8x16xf32>
    %41 = vector.shape_cast %40 : vector<2x8x16xf32> to vector<2x128xf32>
    %42 = vector.extract_strided_slice %27 {offsets = [0, 0, 3], sizes = [2, 8, 1], strides = [1, 1, 1]} : vector<2x8x4xf32> to vector<2x8x1xf32>
    %43 = vector.broadcast %42 : vector<2x8x1xf32> to vector<2x8x16xf32>
    %44 = arith.mulf %43, %29 : vector<2x8x16xf32>
    %45 = vector.shape_cast %44 : vector<2x8x16xf32> to vector<2x128xf32>
    %46 = tpu.concatenate %33, %37, %41, %45 in 1 : vector<2x128xf32>, vector<2x128xf32>, vector<2x128xf32>, vector<2x128xf32> -> vector<2x512xf32>
    %47 = arith.truncf %46 : vector<2x512xf32> to vector<2x512xbf16>
    %c0_10 = arith.constant 0 : index
    %c0_11 = arith.constant 0 : index
    %48 = vector.load %arg3[%c0_10, %c0_11] : memref<512x32xbf16, #tpu.memory_space<vmem>>, vector<512x32xbf16>
    %cst_12 = arith.constant dense<0.000000e+00> : vector<2x32xf32>
    %49 = tpu.matmul %47, %48, %cst_12 {dimension_numbers = #tpu.dot_dimension_numbers<[1], [0], [0], [1], [0, 0, 1, 1], [], []>} : vector<2x512xbf16>, vector<512x32xbf16>, vector<2x32xf32> -> vector<2x32xf32>
    %c0_13 = arith.constant 0 : index
    %c0_14 = arith.constant 0 : index
    %50 = vector.load %arg5[%c0_13, %c0_14] : memref<1x32xf32, #tpu.memory_space<vmem>>, vector<1x32xf32>
    %51 = vector.broadcast %50 : vector<1x32xf32> to vector<2x32xf32>
    %52 = arith.addf %49, %51 : vector<2x32xf32>
    %53 = vector.extract_strided_slice %52 {offsets = [0, 0], sizes = [2, 8], strides = [1, 1]} : vector<2x32xf32> to vector<2x8xf32>
    %54 = arith.mulf %53, %53 : vector<2x8xf32>
    %55 = vector.extract_strided_slice %52 {offsets = [0, 8], sizes = [2, 8], strides = [1, 1]} : vector<2x32xf32> to vector<2x8xf32>
    %56 = arith.mulf %55, %55 : vector<2x8xf32>
    %57 = arith.addf %54, %56 : vector<2x8xf32>
    %58 = vector.extract_strided_slice %52 {offsets = [0, 16], sizes = [2, 8], strides = [1, 1]} : vector<2x32xf32> to vector<2x8xf32>
    %59 = arith.mulf %58, %58 : vector<2x8xf32>
    %60 = arith.addf %57, %59 : vector<2x8xf32>
    %61 = vector.extract_strided_slice %52 {offsets = [0, 24], sizes = [2, 8], strides = [1, 1]} : vector<2x32xf32> to vector<2x8xf32>
    %62 = arith.mulf %61, %61 : vector<2x8xf32>
    %63 = arith.addf %60, %62 : vector<2x8xf32>
    %64 = math.sqrt %63 : vector<2x8xf32>
    %cst_15 = arith.constant 1.000000e+00 : f32
    %65 = vector.broadcast %cst_15 : f32 to vector<2x8xf32>
    %66 = arith.addf %65, %63 : vector<2x8xf32>
    %67 = tpu.reciprocal %66 {approx = true} : vector<2x8xf32> -> vector<2x8xf32>
    %68 = arith.mulf %64, %67 : vector<2x8xf32>
    %69 = tpu.concatenate %68, %68, %68, %68 in 1 : vector<2x8xf32>, vector<2x8xf32>, vector<2x8xf32>, vector<2x8xf32> -> vector<2x32xf32>
    %70 = arith.mulf %52, %69 : vector<2x32xf32>
    %c0_16 = arith.constant 0 : index
    %c0_17 = arith.constant 0 : index
    %71 = vector.load %arg6[%c0_16, %c0_17] : memref<2x32xf32, #tpu.memory_space<vmem>>, vector<2x32xf32>
    tpu.vector_store %arg6[%c0_16, %c0_17], %70 {strides = array<i32>} : memref<2x32xf32, #tpu.memory_space<vmem>>, vector<2x32xf32>,
    return
  }
  func.func @transform_0(%arg0: i32) -> (i32, i32) {
    %c0_i32 = arith.constant 0 : i32
    %c0_i32_0 = arith.constant 0 : i32
    return %arg0, %c0_i32 : i32, i32
  }
  func.func @transform_1(%arg0: i32) -> (i32, i32) {
    %c0_i32 = arith.constant 0 : i32
    %c0_i32_0 = arith.constant 0 : i32
    %c0_i32_1 = arith.constant 0 : i32
    return %c0_i32, %c0_i32_0 : i32, i32
  }
  func.func @transform_2(%arg0: i32) -> (i32, i32) {
    %c0_i32 = arith.constant 0 : i32
    %c0_i32_0 = arith.constant 0 : i32
    %c0_i32_1 = arith.constant 0 : i32
    return %c0_i32, %c0_i32_0 : i32, i32
  }
  func.func @transform_3(%arg0: i32) -> (i32, i32) {
    %c0_i32 = arith.constant 0 : i32
    %c0_i32_0 = arith.constant 0 : i32
    %c0_i32_1 = arith.constant 0 : i32
    return %c0_i32, %c0_i32_0 : i32, i32
  }
  func.func @transform_4(%arg0: i32) -> (i32, i32) {
    %c0_i32 = arith.constant 0 : i32
    %c0_i32_0 = arith.constant 0 : i32
    %c0_i32_1 = arith.constant 0 : i32
    return %c0_i32, %c0_i32_0 : i32, i32
  }
  func.func @transform_5(%arg0: i32) -> (i32, i32) {
    %c0_i32 = arith.constant 0 : i32
    %c0_i32_0 = arith.constant 0 : i32
    return %arg0, %c0_i32 : i32, i32
  }
}

module attributes {stable_mosaic.version = 11 : i64} {
  func.func @capsule_kernel(%arg0: i32, %arg1: memref<16x16xbf16, #tpu.memory_space<vmem>>, %arg2: memref<16x4xbf16, #tpu.memory_space<vmem>>, %arg3: memref<512x32xbf16, #tpu.memory_space<vmem>>, %arg4: memref<8x4xf32, #tpu.memory_space<vmem>>, %arg5: memref<1x32xf32, #tpu.memory_space<vmem>>, %arg6: memref<2x32xf32, #tpu.memory_space<vmem>>) attributes {dimension_semantics = [#tpu.dimension_semantics<parallel>], iteration_bounds = array<i64: 1>, scalar_prefetch = 0 : i64, scratch_operands = 0 : i64, tpu.core_type = #tpu.core_type<tc>, window_params = [{transform_indices = @transform_0, window_bounds = array<i64: 16, 16>}, {pipeline_mode = #tpu.pipeline_mode<synchronous>, transform_indices = @transform_1, window_bounds = array<i64: 16, 4>}, {pipeline_mode = #tpu.pipeline_mode<synchronous>, transform_indices = @transform_2, window_bounds = array<i64: 512, 32>}, {pipeline_mode = #tpu.pipeline_mode<synchronous>, transform_indices = @transform_3, window_bounds = array<i64: 8, 4>}, {pipeline_mode = #tpu.pipeline_mode<synchronous>, transform_indices = @transform_4, window_bounds = array<i64: 1, 32>}, {transform_indices = @transform_5, window_bounds = array<i64: 2, 32>}]} {
    %c0 = arith.constant 0 : index
    %c0_0 = arith.constant 0 : index
    %0 = vector.load %arg1[%c0, %c0_0] : memref<16x16xbf16, #tpu.memory_space<vmem>>, vector<16x16xbf16>
    %c0_1 = arith.constant 0 : index
    %c0_2 = arith.constant 0 : index
    %1 = vector.load %arg2[%c0_1, %c0_2] : memref<16x4xbf16, #tpu.memory_space<vmem>>, vector<16x4xbf16>
    %cst = arith.constant dense<0.000000e+00> : vector<16x4xf32>
    %2 = tpu.matmul %0, %1, %cst {dimension_numbers = #tpu.dot_dimension_numbers<[1], [0], [0], [1], [0, 0, 1, 1], [], []>} : vector<16x16xbf16>, vector<16x4xbf16>, vector<16x4xf32> -> vector<16x4xf32>
    %3 = arith.mulf %2, %2 : vector<16x4xf32>
    %cst_3 = arith.constant dense<0.000000e+00> : vector<16xf32>
    %4 = vector.multi_reduction <add>, %3, %cst_3 [1] : vector<16x4xf32> to vector<16xf32>
    %5 = vector.shape_cast %4 : vector<16xf32> to vector<16x1xf32>
    %cst_4 = arith.constant 1.000000e-24 : f32
    %6 = vector.broadcast %cst_4 : f32 to vector<16x1xf32>
    %7 = arith.maximumf %5, %6 : vector<16x1xf32>
    %8 = math.rsqrt %7 : vector<16x1xf32>
    %9 = vector.broadcast %8 : vector<16x1xf32> to vector<16x4xf32>
    %10 = arith.mulf %2, %9 : vector<16x4xf32>
    %cst_5 = arith.constant dense<0xFF800000> : vector<16xf32>
    %11 = vector.multi_reduction <maximumf>, %10, %cst_5 [1] : vector<16x4xf32> to vector<16xf32>
    %12 = vector.shape_cast %11 : vector<16xf32> to vector<16x1xf32>
    %13 = vector.broadcast %12 : vector<16x1xf32> to vector<16x4xf32>
    %14 = arith.subf %10, %13 : vector<16x4xf32>
    %15 = math.exp %14 : vector<16x4xf32>
    %cst_6 = arith.constant dense<0.000000e+00> : vector<16xf32>
    %16 = vector.multi_reduction <add>, %15, %cst_6 [1] : vector<16x4xf32> to vector<16xf32>
    %17 = vector.shape_cast %16 : vector<16xf32> to vector<16x1xf32>
    %18 = tpu.reciprocal %17 {approx = true} : vector<16x1xf32> -> vector<16x1xf32>
    %19 = vector.broadcast %18 : vector<16x1xf32> to vector<16x4xf32>
    %20 = arith.mulf %15, %19 : vector<16x4xf32>
    %21 = vector.shape_cast %20 : vector<16x4xf32> to vector<2x8x4xf32>
    %c0_7 = arith.constant 0 : index
    %c0_8 = arith.constant 0 : index
    %22 = vector.load %arg4[%c0_7, %c0_8] : memref<8x4xf32, #tpu.memory_space<vmem>>, vector<8x4xf32>
    %23 = vector.shape_cast %22 : vector<8x4xf32> to vector<1x8x4xf32>
    %24 = vector.broadcast %23 : vector<1x8x4xf32> to vector<2x8x4xf32>
    %25 = arith.mulf %21, %24 : vector<2x8x4xf32>
    %cst_9 = arith.constant 1.000000e+00 : f32
    %26 = vector.broadcast %cst_9 : f32 to vector<2x8x4xf32>
    %27 = arith.addf %25, %26 : vector<2x8x4xf32>
    %28 = arith.extf %0 : vector<16x16xbf16> to vector<16x16xf32>
    %29 = vector.shape_cast %28 : vector<16x16xf32> to vector<2x8x16xf32>
    %30 = vector.extract_strided_slice %27 {offsets = [0, 0, 0], sizes = [2, 8, 1], strides = [1, 1, 1]} : vector<2x8x4xf32> to vector<2x8x1xf32>
    %31 = vector.broadcast %30 : vector<2x8x1xf32> to vector<2x8x16xf32>
    %32 = arith.mulf %31, %29 : vector<2x8x16xf32>
    %33 = vector.shape_cast %32 : vector<2x8x16xf32> to vector<2x128xf32>
    %34 = vector.extract_strided_slice %27 {offsets = [0, 0, 1], sizes = [2, 8, 1], strides = [1, 1, 1]} : vector<2x8x4xf32> to vector<2x8x1xf32>
    %35 = vector.broadcast %34 : vector<2x8x1xf32> to vector<2x8x16xf32>
    %36 = arith.mulf %35, %29 : vector<2x8x16xf32>
    %37 = vector.shape_cast %36 : vector<2x8x16xf32> to vector<2x128xf32>
    %38 = vector.extract_strided_slice %27 {offsets = [0, 0, 2], sizes = [2, 8, 1], strides = [1, 1, 1]} : vector<2x8x4xf32> to vector<2x8x1xf32>
    %39 = vector.broadcast %38 : vector<2x8x1xf32> to vector<2x8x16xf32>
    %40 = arith.mulf %39, %29 : vector<2x8x16xf32>
    %41 = vector.shape_cast %40 : vector<2x8x16xf32> to vector<2x128xf32>
    %42 = vector.extract_strided_slice %27 {offsets = [0, 0, 3], sizes = [2, 8, 1], strides = [1, 1, 1]} : vector<2x8x4xf32> to vector<2x8x1xf32>
    %43 = vector.broadcast %42 : vector<2x8x1xf32> to vector<2x8x16xf32>
    %44 = arith.mulf %43, %29 : vector<2x8x16xf32>
    %45 = vector.shape_cast %44 : vector<2x8x16xf32> to vector<2x128xf32>
    %46 = tpu.concatenate %33, %37, %41, %45 in 1 : vector<2x128xf32>, vector<2x128xf32>, vector<2x128xf32>, vector<2x128xf32> -> vector<2x512xf32>
    %47 = arith.truncf %46 : vector<2x512xf32> to vector<2x512xbf16>
    %c0_10 = arith.constant 0 : index
    %c0_11 = arith.constant 0 : index
    %48 = vector.load %arg3[%c0_10, %c0_11] : memref<512x32xbf16, #tpu.memory_space<vmem>>, vector<512x32xbf16>
    %cst_12 = arith.constant dense<0.000000e+00> : vector<2x32xf32>
    %49 = tpu.matmul %47, %48, %cst_12 {dimension_numbers = #tpu.dot_dimension_numbers<[1], [0], [0], [1], [0, 0, 1, 1], [], []>} : vector<2x512xbf16>, vector<512x32xbf16>, vector<2x32xf32> -> vector<2x32xf32>
    %c0_13 = arith.constant 0 : index
    %c0_14 = arith.constant 0 : index
    %50 = vector.load %arg5[%c0_13, %c0_14] : memref<1x32xf32, #tpu.memory_space<vmem>>, vector<1x32xf32>
    %51 = vector.broadcast %50 : vector<1x32xf32> to vector<2x32xf32>
    %52 = arith.addf %49, %51 : vector<2x32xf32>
    %53 = vector.extract_strided_slice %52 {offsets = [0, 0], sizes = [2, 8], strides = [1, 1]} : vector<2x32xf32> to vector<2x8xf32>
    %54 = arith.mulf %53, %53 : vector<2x8xf32>
    %55 = vector.extract_strided_slice %52 {offsets = [0, 8], sizes = [2, 8], strides = [1, 1]} : vector<2x32xf32> to vector<2x8xf32>
    %56 = arith.mulf %55, %55 : vector<2x8xf32>
    %57 = arith.addf %54, %56 : vector<2x8xf32>
    %58 = vector.extract_strided_slice %52 {offsets = [0, 16], sizes = [2, 8], strides = [1, 1]} : vector<2x32xf32> to vector<2x8xf32>
    %59 = arith.mulf %58, %58 : vector<2x8xf32>
    %60 = arith.addf %57, %59 : vector<2x8xf32>
    %61 = vector.extract_strided_slice %52 {offsets = [0, 24], sizes = [2, 8], strides = [1, 1]} : vector<2x32xf32> to vector<2x8xf32>
    %62 = arith.mulf %61, %61 : vector<2x8xf32>
    %63 = arith.addf %60, %62 : vector<2x8xf32>
    %64 = math.sqrt %63 : vector<2x8xf32>
    %cst_15 = arith.constant 1.000000e+00 : f32
    %65 = vector.broadcast %cst_15 : f32 to vector<2x8xf32>
    %66 = arith.addf %65, %63 : vector<2x8xf32>
    %67 = tpu.reciprocal %66 {approx = true} : vector<2x8xf32> -> vector<2x8xf32>
    %68 = arith.mulf %64, %67 : vector<2x8xf32>
    %69 = tpu.concatenate %68, %68, %68, %68 in 1 : vector<2x8xf32>, vector<2x8xf32>, vector<2x8xf32>, vector<2x8xf32> -> vector<2x32xf32>
    %70 = arith.mulf %52, %69 : vector<2x32xf32>
    %c0_16 = arith.constant 0 : index
    %c0_17 = arith.constant 0 : index
    %71 = vector.load %arg6[%c0_16, %c0_17] : memref<2x32xf32, #tpu.memory_space<vmem>>, vector<2x32xf32>
    tpu.vector_store %arg6[%c0_16, %c0_17], %70 {strides = array<i32>} : memref<2x32xf32, #tpu.memory_space<vmem>>, vector<2x32xf32>,
    return
  }
  func.func @transform_0(%arg0: i32) -> (i32, i32) {
    %c0_i32 = arith.constant 0 : i32
    %c0_i32_0 = arith.constant 0 : i32
    return %arg0, %c0_i32 : i32, i32
  }
  func.func @transform_1(%arg0: i32) -> (i32, i32) {
    %c0_i32 = arith.constant 0 : i32
    %c0_i32_0 = arith.constant 0 : i32
    %c0_i32_1 = arith.constant 0 : i32
    return %c0_i32, %c0_i32_0 : i32, i32
  }
  func.func @transform_2(%arg0: i32) -> (i32, i32) {
    %c0_i32 = arith.constant 0 : i32
    %c0_i32_0 = arith.constant 0 : i32
    %c0_i32_1 = arith.constant 0 : i32
    return %c0_i32, %c0_i32_0 : i32, i32
  }
  func.func @transform_3(%arg0: i32) -> (i32, i32) {
    %c0_i32 = arith.constant 0 : i32
    %c0_i32_0 = arith.constant 0 : i32
    %c0_i32_1 = arith.constant 0 : i32
    return %c0_i32, %c0_i32_0 : i32, i32
  }
  func.func @transform_4(%arg0: i32) -> (i32, i32) {
    %c0_i32 = arith.constant 0 : i32
    %c0_i32_0 = arith.constant 0 : i32
    %c0_i32_1 = arith.constant 0 : i32
    return %c0_i32, %c0_i32_0 : i32, i32
  }
  func.func @transform_5(%arg0: i32) -> (i32, i32) {
    %c0_i32 = arith.constant 0 : i32
    %c0_i32_0 = arith.constant 0 : i32
    return %arg0, %c0_i32 : i32, i32
  }
}

</mosaic_0001>

<bundles_post_ra>
// kernel: tpu_custom_call.1
= control target key start
LH: loop header
LB: loop body
LE: loop exit
PB: predicated region body
PF: predicated region fallthrough
CT: control target
= control target key end

     0   :  { %v1243_v1 = vmov 0.0   ;;  %vm37_vm0 = vcmask 130048   ;;  %vm1244_vm1 = vmmov 0   ;;  %s1560_s0 = inlined_call_operand.vmem [shape: bf16[16,16], index: 0, kind: input, shape index: {}]   ;;  %s1561_s1 = inlined_call_operand.vmem [shape: bf16[16,4], index: 1, kind: input, shape index: {}]   ;;  %s1562_s2 = inlined_call_operand.vmem [shape: bf16[512,32], index: 2, kind: input, shape index: {}]   ;;  %s1563_s3 = inlined_call_operand.vmem [shape: f32[8,4], index: 3, kind: input, shape index: {}]   ;;  %s1564_s4 = inlined_call_operand.vmem [shape: f32[1,32], index: 4, kind: input, shape index: {}]   ;;  %s1565_s5 = inlined_call_operand.hbm [shape: f32[2,32], index: 5, kind: output, shape index: {}]  }
   0x1   :  { %v1168_v0 = vld [vmem:[%s1561_s1] sm:$0xff]   ;;  %1063 = vmatprep.subr.bf16.mxu0 %v1243_v1  ;;  %1065 = vmatprep.mubr.msk.bf16.mxu0 %vm1244_vm1, %v1243_v1 }
   0x2   :  { %v1300_v2 = vld [vmem:[%s1560_s0] sm:$0xff]   ;;  %1064 = vmatpush3.bf16.msra.mxu0 %v1168_v0 }
   0x5   :  { %1066 = vmatmul.mubr.msk.bf16.vlgmr.msra.gmra.mrb[0].mxu0 %vm37_vm0, %v1300_v2 }
   0x6   :  { %10 = vsyncpa [#allocation3], 0  ;;  %vm84_vm2 = vcmask 31744   ;;  %v1245_v31 = vmov 1   ;;  %v1246_v32 = vmov 0   ;;  %v119_v36 = vld [vmem:[%s1563_s3] sm:$0xff]  ;;  %v142_v52 = vlaneseq }
   0x7   :  { %1089 = vset.pattern.permute.xlu0 %v1245_v31  ;;  %1090 = vset.pattern.permute.xlu1 %v1246_v32  ;;  %v1247_v41 = vmov 3   ;;  %v1248_v43 = vmov 2   ;;  %v1170_v46 = vld [vmem:[%s1562_s2 + $0x40] sm:$0xff]   ;;  %v1249_v50 = vmov 1983009808   ;;  %v124_v54 = vunpack.c.l.bf16 %v1300_v2  ;;  %s1251_s3 = smov 32  }
   0x8   :  { %v1171_v47 = vld [vmem:[%s1562_s2] sm:$0xff]   ;;  %1019 = vmatprep.subr.bf16.mxu1 %v1170_v46  ;;  %v140_v51 = vunpack.c.l.s4 %v1249_v50  ;;  %v143_v56 = vshrl.u32 %v142_v52, 7  ;;  %v1322_v58 = vunpack.c.h.bf16 %v1300_v2  ;;  %v1250_v59 = vmov 1934713408   ;;  %v1173_v2 = vld [vmem:[%s1562_s2 + $0x8] sm:$0xff]   ;;  %s1252_s26 = smov 16  }
   0x9   :  { %1020 = vmatpush3.bf16.msra.mxu1 %v1171_v47  ;;  %v171_v60 = vunpack.c.l.s4 %v1250_v59  ;;  %v1182_v47 = vld [vmem:[%s1562_s2 + $0x60] sm:$0xff]   ;;  %s1253_s10 = smov 48   ;;  %s1254_s19 = smov 64   ;;  %vm233_vm3 = vcmask 261120   ;;  %vm235_vm4 = vcmask 392192   ;;  %vm237_vm5 = vcmask 523264  }
   0xa   :  { %v141_v55 = vunpack.c.0.s8 %v140_v51  ;;  %s1255_s25 = smov 96   ;;  %s1256_s6 = smov 80   ;;  %vm239_vm6 = vcmask 654336   ;;  %vm241_vm7 = vcmask 785408   ;;  %vm243_vm8 = vcmask 916480  }
   0xb   :  { %s1257_s11 = smov 112   ;;  %s1258_s13 = smov 120   ;;  %vm959_vm11 = vcmask 64512   ;;  %vm962_vm12 = vcmask 195584   ;;  %vm965_vm13 = vcmask 254976  }
   0xc   :  { %v1324_v61 = vsub.s32 %v141_v55, %v143_v56  ;;  %s1259_s14 = smov 104   ;;  %s1261_s15 = smov 24  }
   0xd   :  { %s1262_s16 = smov [#allocation2]  }
   0xe   :  { %s973_s17 = sshll.u32 %s1262_s16, 4  ;;  %s974_s17 = int_to_ptr.vmem [resolvable:$true] %s973_s17 }
   0xf   :  { %p1224_p1 = scmp.lt.s32.totalorder %s974_s17, %s974_s17 }
  0xd8   :  { %v75_v3 = vpop.f32.mrb[0].mxu0 }
  0xd9   :  { %v1067_v4 = vpop.f32.mrb[1].mxu0  ;;  %v82_v5 = vmul.f32 %v75_v3, %v75_v3 }
  0xda   :  { %v78_v6 = vpop.f32.mrb[2].mxu0 }
  0xdb   :  { %v83_v7 = vmul.f32 %v78_v6, %v78_v6  ;;  %v1068_v8 = vpop.f32.mrb[3].mxu0  ;;  %v85_v9 = vsel %vm84_vm2, %v82_v5, 0.0  ;;  %v1172_v5 = vld [vmem:[%s1562_s2 + $0x48] sm:$0xff]  }
  0xdc   :  { %86 = vadd.xlane.f32.xlu0 %v85_v9  ;;  %1021 = vmatprep.subr.bf16.mxu1 %v1172_v5 }
  0xdd   :  { %v88_v10 = vsel %vm84_vm2, %v83_v7, 0.0  ;;  %1022 = vmatpush3.bf16.msra.mxu1 %v1173_v2 }
  0xe0   :  { %89 = vadd.xlane.f32.xlu0 %v88_v10 }
 0x169   :  { %v87_v11 = vpop.xlane.xlu0 %86 }
 0x16a   :  { %v91_v12 = vmax.f32 %v87_v11, 1e-24 }
 0x16c   :  { %1203 = vrsqrt.f32 %v91_v12  ;;  %v1174_v12 = vld [vmem:[%s1562_s2 + $0x50] sm:$0xff]  }
 0x16d   :  { %v90_v13 = vpop.xlane.xlu0 %89  ;;  %1023 = vmatprep.subr.bf16.mxu1 %v1174_v12 }
 0x16e   :  { %v92_v14 = vmax.f32 %v90_v13, 1e-24  ;;  %v1175_v13 = vld [vmem:[%s1562_s2 + $0xc0] sm:$0xff]  }
 0x16f   :  { %1041 = vmatprep.subr.bf16.mxu0 %v1175_v13  ;;  %v1189_v13 = vld [vmem:[%s1562_s2 + $0x98] sm:$0xff]  }
 0x170   :  { %1205 = vrsqrt.f32 %v92_v14  ;;  %v1176_v14 = vld [vmem:[%s1562_s2 + $0x10] sm:$0xff]  }
 0x171   :  { %1024 = vmatpush3.bf16.msra.mxu1 %v1176_v14 }
 0x176   :  { %v1204_v15 = vpop.eup %1203 }
 0x177   :  { %v95_v16 = vmul.f32 %v1204_v15, %v75_v3  ;;  %v172_v3 = vunpack.c.0.s8 %v171_v60 }
 0x179   :  { %v97_v17 = vsel %vm84_vm2, %v95_v16, -inf  ;;  %v1335_v9 = vsub.s32 %v172_v3, %v143_v56  ;;  %v1185_v56 = vld [vmem:[%s1562_s2 + $0x90] sm:$0xff]   ;;  %v1186_v3 = vld [vmem:[%s1562_s2 + $0x68] sm:$0xff]  }
 0x17a   :  { %v1206_v18 = vpop.eup %1205  ;;  %98 = vmax.xlane.f32.xlu1 %v97_v17 }
 0x17b   :  { %v96_v19 = vmul.f32 %v1206_v18, %v78_v6 }
 0x17d   :  { %v100_v20 = vsel %vm84_vm2, %v96_v19, -inf }
 0x17e   :  { %101 = vmax.xlane.f32.xlu1 %v100_v20 }
 0x207   :  { %v99_v21 = vpop.xlane.xlu1 %98 }
 0x208   :  { %v103_v22 = vsub.f32 %v95_v16, %v99_v21 }
 0x20a   :  { %v105_v23 = vmul.f32 1.442695, %v103_v22 }
 0x20b   :  { %v102_v24 = vpop.xlane.xlu1 %101 }
 0x20c   :  { %1207 = vpow2.f32 %v105_v23  ;;  %v104_v25 = vsub.f32 %v96_v19, %v102_v24  ;;  %v1177_v19 = vld [vmem:[%s1562_s2 + $0x80] sm:$0xff]  }
 0x20d   :  { %1042 = vmatpush3.bf16.msra.mxu0 %v1177_v19 }
 0x20e   :  { %v107_v26 = vmul.f32 1.442695, %v104_v25 }
 0x210   :  { %1209 = vpow2.f32 %v107_v26 }
 0x216   :  { %v1208_v27 = vpop.eup %1207 }
 0x217   :  { %v109_v28 = vsel %vm84_vm2, %v1208_v27, 0.0 }
 0x218   :  { %110 = vadd.xlane.f32.xlu0 %v109_v28 }
 0x21a   :  { %v1210_v29 = vpop.eup %1209 }
 0x21b   :  { %v112_v30 = vsel %vm84_vm2, %v1210_v29, 0.0 }
 0x21c   :  { %113 = vadd.xlane.f32.xlu1 %v112_v30  ;;  %v1179_v30 = vld [vmem:[%s1562_s2 + $0xc8] sm:$0xff]  }
 0x21d   :  { %1043 = vmatprep.subr.bf16.mxu0 %v1179_v30 }
 0x2a5   :  { %v111_v33 = vpop.xlane.xlu0 %110 }
 0x2a6   :  { %1211 = vrcp.f32 %v111_v33 }
 0x2a9   :  { %v114_v34 = vpop.xlane.xlu1 %113 }
 0x2aa   :  { %1213 = vrcp.f32 %v114_v34 }
 0x2b0   :  { %v1212_v35 = vpop.eup %1211 }
 0x2b1   :  { %v117_v37 = vmul.f32 %v1212_v35, %v1208_v27 }
 0x2b3   :  { %v120_v38 = vmul.f32 %v119_v36, %v117_v37 }
 0x2b4   :  { %v1214_v40 = vpop.eup %1213 }
 0x2b5   :  { %v122_v39 = vadd.f32 1.0, %v120_v38  ;;  %v118_v42 = vmul.f32 %v1214_v40, %v1210_v29  ;;  %v1178_v29 = vld [vmem:[%s1562_s2 + $0x58] sm:$0xff]  }
 0x2b6   :  { %1025 = vmatprep.subr.bf16.mxu1 %v1178_v29  ;;  %v1193_v29 = vld [vmem:[%s1562_s2 + $0xa0] sm:$0xff]  }
 0x2b7   :  { %128 = vperm.xlu1 %1090, %v122_v39   ;;  %246 = vperm.xlu0 %1089, %v122_v39   ;;  %v121_v44 = vmul.f32 %v119_v36, %v118_v42  ;;  %v1181_v36 = vld [vmem:[%s1562_s2 + $0x88] sm:$0xff]  }
 0x2b8   :  { %1044 = vmatpush3.bf16.msra.mxu0 %v1181_v36  ;;  %v1194_v36 = vld [vmem:[%s1562_s2 + $0x78] sm:$0xff]  }
 0x2b9   :  { %v123_v45 = vadd.f32 1.0, %v121_v44 }
 0x2bb   :  { %1091 = vset.pattern.permute.xlu1 %v1247_v41  ;;  %1167 = vset.pattern.permute.xlu0 %v1247_v41 }
 0x2bc   :  { %468 = vperm.xlu1 %1091, %v122_v39  }
 0x2c0   :  { %1092 = vset.pattern.permute.xlu1 %v1248_v43 }
 0x2c1   :  { %357 = vperm.xlu1 %1092, %v122_v39  }
 0x2c5   :  { %1093 = vset.pattern.permute.xlu1 %v1245_v31  ;;  %v1180_v31 = vld [vmem:[%s1562_s2 + $0x18] sm:$0xff]  }
 0x2c6   :  { %250 = vperm.xlu1 %1093, %v123_v45   ;;  %1026 = vmatpush3.bf16.msra.mxu1 %v1180_v31 }
 0x2c7   :  { %1027 = vmatprep.subr.bf16.mxu1 %v1182_v47 }
 0x2ca   :  { %1094 = vset.pattern.permute.xlu1 %v1246_v32 }
 0x2cb   :  { %133 = vperm.xlu1 %1094, %v123_v45  }
 0x2cf   :  { %1095 = vset.pattern.permute.xlu1 %v1247_v41 }
 0x2d0   :  { %472 = vperm.xlu1 %1095, %v123_v45  }
 0x2d4   :  { %1096 = vset.pattern.permute.xlu1 %v1248_v43 }
 0x2d5   :  { %361 = vperm.xlu1 %1096, %v123_v45  }
 0x336   :  { %v129_v48 = vpop.permute.xlu1 %128  ;;  %v247_v57 = vpop.permute.xlu0 %246 }
 0x337   :  { %v253_v62 = vmul.f32 %v247_v57, %v124_v54  ;;  %v136_v6 = vmul.f32 %v129_v48, %v124_v54  ;;  %v1183_v48 = vld [vmem:[%s1562_s2 + $0xd0] sm:$0xff]  }
 0x338   :  { %1045 = vmatprep.subr.bf16.mxu0 %v1183_v48 }
 0x339   :  { %v262_v7 = vrot.slane %v253_v62, %v1324_v61  ;;  %v145_v15 = vrot.slane %v136_v6, %v1324_v61  ;;  %v138_v20 = vcombine.high %v136_v6, %v1243_v1  ;;  %v255_v26 = vcombine.high %v253_v62, %v1243_v1  ;;  %1046 = vmatpush3.bf16.msra.mxu0 %v1185_v56 }
 0x33b   :  { %v469_v49 = vpop.permute.xlu1 %468  ;;  %v152_v37 = vrot.slane %v138_v20, %v1324_v61  ;;  %v269_v44 = vrot.slane %v255_v26, %v1324_v61  ;;  %v1190_v20 = vld [vmem:[%s1562_s2 + $0x70] sm:$0xff]  }
 0x33c   :  { %v475_v32 = vmul.f32 %v469_v49, %v124_v54 }
 0x33e   :  { %v484_v49 = vrot.slane %v475_v32, %v1324_v61 }
 0x340   :  { %v358_v53 = vpop.permute.xlu1 %357 }
 0x341   :  { %v364_v38 = vmul.f32 %v358_v53, %v124_v54  ;;  %v1184_v53 = vld [vmem:[%s1562_s2 + $0x20] sm:$0xff]  }
 0x342   :  { %1028 = vmatpush3.bf16.msra.mxu1 %v1184_v53 }
 0x343   :  { %v373_v54 = vrot.slane %v364_v38, %v1324_v61  ;;  %v366_v62 = vcombine.high %v364_v38, %v1243_v1  ;;  %1029 = vmatprep.subr.bf16.mxu1 %v1186_v3 }
 0x345   :  { %v251_v63 = vpop.permute.xlu1 %250  ;;  %v380_v30 = vrot.slane %v366_v62, %v1324_v61  ;;  %v1201_v62 = vld [vmem:[%s1562_s2 + $0xb8] sm:$0xff]  }
 0x346   :  { %v254_v0 = vmul.f32 %v251_v63, %v1322_v58 }
 0x348   :  { %v277_v4 = vrot.slane %v254_v0, %v1324_v61  ;;  %v270_v21 = vcombine.high %v254_v0, %v1243_v1 }
 0x34a   :  { %v134_v8 = vpop.permute.xlu1 %133  ;;  %v285_v10 = vcombine.low %v262_v7, %v277_v4  ;;  %v286_v16 = vcombine.high %v262_v7, %v277_v4  ;;  %v1382_v39 = vrot.slane %v270_v21, %v1324_v61  ;;  %v1187_v4 = vld [vmem:[%s1562_s2 + $0xd8] sm:$0xff]   ;;  %v1191_v21 = vld [vmem:[%s1562_s2 + $0xe0] sm:$0xff]  }
 0x34b   :  { %v137_v11 = vmul.f32 %v134_v8, %v1322_v58  ;;  %v1188_v8 = vld [vmem:[%s1562_s2 + $0x28] sm:$0xff]   ;;  %1047 = vmatprep.subr.bf16.mxu0 %v1187_v4 }
 0x34c   :  { %v1356_v22 = vrot.slane %v285_v10, %v1335_v9  ;;  %v300_v35 = vrot.slane %v286_v16, %v1335_v9  ;;  %v301_v55 = vcombine.low %v269_v44, %v1382_v39  ;;  %v302_v10 = vcombine.high %v269_v44, %v1382_v39  ;;  %1030 = vmatpush3.bf16.msra.mxu1 %v1188_v8 }
 0x34d   :  { %v153_v17 = vcombine.high %v137_v11, %v1243_v1  ;;  %v160_v18 = vrot.slane %v137_v11, %v1324_v61  ;;  %1048 = vmatpush3.bf16.msra.mxu0 %v1189_v13  ;;  %1031 = vmatprep.subr.bf16.mxu1 %v1190_v20 }
 0x34e   :  { %v317_v43 = vcombine.high %v1356_v22, %v1243_v1  ;;  %v318_v60 = vcombine.high %v300_v35, %v1243_v1  ;;  %v309_v12 = vrot.slane %v301_v55, %v1335_v9  ;;  %1049 = vmatprep.subr.bf16.mxu0 %v1191_v21 }
 0x34f   :  { %v168_v23 = vcombine.low %v145_v15, %v160_v18  ;;  %v169_v24 = vcombine.high %v145_v15, %v160_v18  ;;  %v473_v25 = vpop.permute.xlu1 %472  ;;  %v1360_v27 = vrot.slane %v153_v17, %v1324_v61  ;;  %v477_v18 = vcombine.high %v475_v32, %v1243_v1 }
 0x350   :  { %v476_v28 = vmul.f32 %v473_v25, %v1322_v58 }
 0x351   :  { %v1373_v33 = vrot.slane %v168_v23, %v1335_v9  ;;  %v183_v34 = vrot.slane %v169_v24, %v1335_v9  ;;  %v184_v45 = vcombine.low %v152_v37, %v1360_v27  ;;  %v185_v63 = vcombine.high %v152_v37, %v1360_v27  ;;  %v1192_v27 = vld [vmem:[%s1562_s2 + $0x30] sm:$0xff]   ;;  %v1195_v37 = vld [vmem:[%s1562_s2 + $0xe8] sm:$0xff]   ;;  %1050 = vmatpush3.bf16.msra.mxu0 %v1193_v29 }
 0x352   :  { %v499_v40 = vrot.slane %v476_v28, %v1324_v61  ;;  %v492_v11 = vcombine.high %v476_v28, %v1243_v1  ;;  %v316_v28 = vrot.slane %v302_v10, %v1335_v9  ;;  %1032 = vmatpush3.bf16.msra.mxu1 %v1192_v27  ;;  %1051 = vmatprep.subr.bf16.mxu0 %v1195_v37 }
 0x353   :  { %v1097_v41 = vpack.i.bf16 %v183_v34, %v300_v35  ;;  %v200_v42 = vcombine.high %v1373_v33, %v1243_v1  ;;  %v201_v52 = vcombine.high %v183_v34, %v1243_v1  ;;  %v192_v0 = vrot.slane %v184_v45, %v1335_v9  ;;  %1033 = vmatprep.subr.bf16.mxu1 %v1194_v36 }
 0x354   :  { %v362_v46 = vpop.permute.xlu1 %361  ;;  %v507_v57 = vcombine.low %v484_v49, %v499_v40  ;;  %v199_v19 = vrot.slane %v185_v63, %v1335_v9  ;;  %v506_v31 = vrot.slane %v492_v11, %v1324_v61  ;;  %v491_v34 = vrot.slane %v477_v18, %v1324_v61 }
 0x355   :  { %v365_v50 = vmul.f32 %v362_v46, %v1322_v58  ;;  %1098 = vrot.lane.b32.xlu0 %v1097_v41, %s1251_s3  ;;  %v1107_v51 = vpack.i.bf16 %v200_v42, %v317_v43  ;;  %v508_v58 = vcombine.high %v484_v49, %v499_v40  ;;  %v1112_v7 = vpack.i.bf16 %v201_v52, %v318_v60  ;;  %v1197_v42 = vld [vmem:[%s1562_s2 + $0xa8] sm:$0xff]   ;;  %v1199_v52 = vld [vmem:[%s1562_s2 + $0xb0] sm:$0xff]   ;;  %v1200_v60 = vld [vmem:[%s1562_s2 + $0xf8] sm:$0xff]  }
 0x356   :  { %v1432_v14 = vrot.slane %v507_v57, %v1335_v9  ;;  %v1122_v25 = vpack.i.bf16 %v192_v0, %v309_v12  ;;  %v1132_v35 = vpack.i.bf16 %v199_v19, %v316_v28  ;;  %v202_v41 = vcombine.high %v192_v0, %v1243_v1  ;;  %1052 = vmatpush3.bf16.msra.mxu0 %v1197_v42 }
 0x357   :  { %v388_v59 = vrot.slane %v365_v50, %v1324_v61  ;;  %1108 = vrot.lane.b32.xlu1 %v1107_v51, %s1252_s26  ;;  %v381_v5 = vcombine.high %v365_v50, %v1243_v1  ;;  %v522_v17 = vrot.slane %v508_v58, %v1335_v9  ;;  %v523_v43 = vcombine.low %v491_v34, %v506_v31  ;;  %v1198_v51 = vld [vmem:[%s1562_s2 + $0xf0] sm:$0xff]  }
 0x358   :  { %v539_v32 = vcombine.high %v1432_v14, %v1243_v1  ;;  %v319_v45 = vcombine.high %v309_v12, %v1243_v1  ;;  %v203_v46 = vcombine.high %v199_v19, %v1243_v1  ;;  %v524_v53 = vcombine.high %v491_v34, %v506_v31  ;;  %1053 = vmatprep.subr.bf16.mxu0 %v1198_v51 }
 0x359   :  { %v396_v2 = vcombine.low %v373_v54, %v388_v59  ;;  %v397_v6 = vcombine.high %v373_v54, %v388_v59  ;;  %v395_v23 = vrot.slane %v381_v5, %v1324_v61  ;;  %v1196_v61 = vld [vmem:[%s1562_s2 + $0x38] sm:$0xff]   ;;  %v540_v44 = vcombine.high %v522_v17, %v1243_v1 }
 0x35a   :  { %v1142_v49 = vpack.i.bf16 %v202_v41, %v319_v45  ;;  %1034 = vmatpush3.bf16.msra.mxu1 %v1196_v61  ;;  %v531_v54 = vrot.slane %v523_v43, %v1335_v9  ;;  %v320_v55 = vcombine.high %v316_v28, %v1243_v1  ;;  %1054 = vmatpush3.bf16.msra.mxu0 %v1199_v52 }
 0x35b   :  { %v1435_v15 = vrot.slane %v396_v2, %v1335_v9  ;;  %1113 = vrot.lane.b32.xlu1 %v1112_v7, %s1253_s10  ;;  %v411_v16 = vrot.slane %v397_v6, %v1335_v9  ;;  %v412_v38 = vcombine.low %v380_v30, %v395_v23  ;;  %v413_v47 = vcombine.high %v380_v30, %v395_v23 }
 0x35c   :  { %v1147_v57 = vpack.i.bf16 %v203_v46, %v320_v55  ;;  %v541_v63 = vcombine.high %v531_v54, %v1243_v1  ;;  %v538_v0 = vrot.slane %v524_v53, %v1335_v9  ;;  %1055 = vmatprep.subr.bf16.mxu0 %v1200_v60 }
 0x35d   :  { %v1102_v24 = vpack.i.bf16 %v411_v16, %v522_v17  ;;  %v428_v26 = vcombine.high %v1435_v15, %v1243_v1  ;;  %v429_v40 = vcombine.high %v411_v16, %v1243_v1  ;;  %v420_v50 = vrot.slane %v412_v38, %v1335_v9 }
 0x35e   :  { %v427_v59 = vrot.slane %v413_v47, %v1335_v9  ;;  %1056 = vmatpush3.bf16.msra.mxu0 %v1201_v62  ;;  %v542_v2 = vcombine.high %v538_v0, %v1243_v1 }
 0x35f   :  { %1103 = vrot.lane.b32.xlu0 %v1102_v24, %s1251_s3  ;;  %1123 = vrot.lane.b32.xlu1 %v1122_v25, %s1254_s19  ;;  %v1117_v39 = vpack.i.bf16 %v428_v26, %v539_v32  ;;  %v1127_v48 = vpack.i.bf16 %v429_v40, %v540_v44  ;;  %v1137_v56 = vpack.i.bf16 %v420_v50, %v531_v54 }
 0x360   :  { %v430_v58 = vcombine.high %v420_v50, %v1243_v1  ;;  %v1152_v4 = vpack.i.bf16 %v427_v59, %v538_v0  ;;  %v431_v5 = vcombine.high %v427_v59, %v1243_v1 }
 0x362   :  { %v1157_v3 = vpack.i.bf16 %v430_v58, %v541_v63  ;;  %v1162_v6 = vpack.i.bf16 %v431_v5, %v542_v2 }
 0x363   :  { %1118 = vrot.lane.b32.xlu0 %v1117_v39, %s1252_s26  ;;  %1133 = vrot.lane.b32.xlu1 %v1132_v35, %s1255_s25 }
 0x367   :  { %1128 = vrot.lane.b32.xlu0 %v1127_v48, %s1253_s10  ;;  %1143 = vrot.lane.b32.xlu1 %v1142_v49, %s1256_s6 }
 0x36b   :  { %1138 = vrot.lane.b32.xlu0 %v1137_v56, %s1254_s19  ;;  %1148 = vrot.lane.b32.xlu1 %v1147_v57, %s1257_s11 }
 0x36f   :  { %1158 = vrot.lane.b32.xlu0 %v1157_v3, %s1256_s6  ;;  %1153 = vrot.lane.b32.xlu1 %v1152_v4, %s1255_s25 }
 0x373   :  { %1163 = vrot.lane.b32.xlu0 %v1162_v6, %s1257_s11 }
 0x3c7   :  { %v1099_v8 = vpop.permute.xlu0 %1098 }
 0x3c8   :  { %v1101_v21 = vunpack.i.h.bf16 %v1099_v8  ;;  %v1100_v23 = vunpack.i.l.bf16 %v1099_v8 }
 0x3c9   :  { %v1109_v7 = vpop.permute.xlu1 %1108 }
 0x3ca   :  { %v1111_v9 = vunpack.i.h.bf16 %v1109_v7  ;;  %v1110_v13 = vunpack.i.l.bf16 %v1109_v7 }
 0x3cc   :  { %v232_v18 = vsel %vm37_vm0, %v1373_v33, %v1111_v9  ;;  %v349_v1 = vsel %vm37_vm0, %v1356_v22, %v1110_v13 }
 0x3cd   :  { %v1114_v10 = vpop.permute.xlu1 %1113  ;;  %v234_v26 = vsel %vm233_vm3, %v232_v18, %v1101_v21  ;;  %v350_v27 = vsel %vm233_vm3, %v349_v1, %v1100_v23 }
 0x3ce   :  { %v1116_v19 = vunpack.i.h.bf16 %v1114_v10  ;;  %v1115_v20 = vunpack.i.l.bf16 %v1114_v10 }
 0x3d0   :  { %v236_v33 = vsel %vm235_vm4, %v234_v26, %v1116_v19  ;;  %v351_v22 = vsel %vm235_vm4, %v350_v27, %v1115_v20 }
 0x3d1   :  { %v1104_v11 = vpop.permute.xlu0 %1103  ;;  %v1124_v12 = vpop.permute.xlu1 %1123 }
 0x3d2   :  { %v1126_v24 = vunpack.i.h.bf16 %v1124_v12  ;;  %v1125_v25 = vunpack.i.l.bf16 %v1124_v12  ;;  %v1106_v37 = vunpack.i.h.bf16 %v1104_v11  ;;  %v1105_v38 = vunpack.i.l.bf16 %v1104_v11 }
 0x3d4   :  { %v238_v35 = vsel %vm237_vm5, %v236_v33, %v1126_v24  ;;  %v352_v36 = vsel %vm237_vm5, %v351_v22, %v1125_v25  ;;  %v984_v24 = vld [vmem:[%s1564_s4] ss:$0 sm:$0xff]  ;;  %s1260_s4 = smov 8  }
 0x3d5   :  { %v1119_v16 = vpop.permute.xlu0 %1118  ;;  %v1134_v17 = vpop.permute.xlu1 %1133 }
 0x3d6   :  { %v1121_v28 = vunpack.i.h.bf16 %v1119_v16  ;;  %v1120_v29 = vunpack.i.l.bf16 %v1119_v16  ;;  %v1136_v42 = vunpack.i.h.bf16 %v1134_v17  ;;  %v1135_v43 = vunpack.i.l.bf16 %v1134_v17 }
 0x3d8   :  { %v460_v41 = vsel %vm37_vm0, %v1435_v15, %v1121_v28  ;;  %v571_v61 = vsel %vm37_vm0, %v1432_v14, %v1120_v29 }
 0x3d9   :  { %v1129_v30 = vpop.permute.xlu0 %1128  ;;  %v1144_v31 = vpop.permute.xlu1 %1143  ;;  %v461_v14 = vsel %vm233_vm3, %v460_v41, %v1106_v37  ;;  %v572_v55 = vsel %vm233_vm3, %v571_v61, %v1105_v38 }
 0x3da   :  { %v1146_v32 = vunpack.i.h.bf16 %v1144_v31  ;;  %v1145_v34 = vunpack.i.l.bf16 %v1144_v31  ;;  %v1131_v46 = vunpack.i.h.bf16 %v1129_v30  ;;  %v1130_v47 = vunpack.i.l.bf16 %v1129_v30 }
 0x3dc   :  { %v240_v39 = vsel %vm239_vm6, %v238_v35, %v1146_v32  ;;  %v353_v40 = vsel %vm239_vm6, %v352_v36, %v1145_v34  ;;  %v462_v60 = vsel %vm235_vm4, %v461_v14, %v1131_v46  ;;  %v573_v62 = vsel %vm235_vm4, %v572_v55, %v1130_v47 }
 0x3dd   :  { %v1139_v44 = vpop.permute.xlu0 %1138  ;;  %v1149_v45 = vpop.permute.xlu1 %1148  ;;  %v354_v52 = vsel %vm241_vm7, %v353_v40, %v1135_v43  ;;  %v242_v53 = vsel %vm241_vm7, %v240_v39, %v1136_v42 }
 0x3de   :  { %v1151_v48 = vunpack.i.h.bf16 %v1149_v45  ;;  %v1150_v49 = vunpack.i.l.bf16 %v1149_v45  ;;  %v1141_v50 = vunpack.i.h.bf16 %v1139_v44  ;;  %v1140_v51 = vunpack.i.l.bf16 %v1139_v44 }
 0x3e0   :  { %v355_v54 = vsel %vm243_vm8, %v354_v52, %v1150_v49  ;;  %v244_v15 = vsel %vm243_vm8, %v242_v53, %v1151_v48  ;;  %v463_v3 = vsel %vm237_vm5, %v462_v60, %v1141_v50  ;;  %v574_v4 = vsel %vm237_vm5, %v573_v62, %v1140_v51 }
 0x3e1   :  { %v1159_v56 = vpop.permute.xlu0 %1158  ;;  %v1154_v57 = vpop.permute.xlu1 %1153  ;;  %v579_v58 = vpack.c.bf16 %v355_v54, %v355_v54  ;;  %v578_v59 = vpack.c.bf16 %v244_v15, %v244_v15 }
 0x3e2   :  { %v1161_v63 = vunpack.i.h.bf16 %v1159_v56  ;;  %v1160_v0 = vunpack.i.l.bf16 %v1159_v56  ;;  %v1156_v5 = vunpack.i.h.bf16 %v1154_v57  ;;  %v1155_v2 = vunpack.i.l.bf16 %v1154_v57 }
 0x3e3   :  { %877 = vmatprep.mubr.bf16.mxu1 %v579_v58 }
 0x3e4   :  { %v464_v6 = vsel %vm239_vm6, %v463_v3, %v1161_v63  ;;  %v575_v7 = vsel %vm239_vm6, %v574_v4, %v1160_v0  ;;  %878 = vmatmul.mubr.bf16.vlgmr.msra.gmra.mrb[0].mxu1 %v578_v59 }
 0x3e5   :  { %v1164_v8 = vpop.permute.xlu0 %1163  ;;  %v465_v12 = vsel %vm241_vm7, %v464_v6, %v1156_v5  ;;  %v576_v9 = vsel %vm241_vm7, %v575_v7, %v1155_v2 }
 0x3e6   :  { %v1166_v10 = vunpack.i.h.bf16 %v1164_v8  ;;  %v1165_v11 = vunpack.i.l.bf16 %v1164_v8 }
 0x3e8   :  { %v466_v13 = vsel %vm243_vm8, %v465_v12, %v1166_v10  ;;  %v577_v16 = vsel %vm243_vm8, %v576_v9, %v1165_v11 }
 0x3e9   :  { %v580_v17 = vpack.c.bf16 %v466_v13, %v466_v13  ;;  %v581_v18 = vpack.c.bf16 %v577_v16, %v577_v16 }
 0x3eb   :  { %917 = vmatprep.mubr.bf16.mxu0 %v581_v18 }
 0x3ec   :  { %918 = vmatmul.mubr.bf16.vlgmr.msra.gmra.mrb[4].mxu0 %v580_v17 }
 0x4b7   :  { %v1035_v1 = vpop.f32.mrb[0].mxu1 }
 0x4b8   :  { %v1036_v19 = vpop.f32.mrb[1].mxu1 }
 0x4b9   :  { %v1037_v20 = vadd.f32 %v1036_v19, %v1035_v1  ;;  %v1038_v21 = vpop.f32.mrb[2].mxu1 }
 0x4ba   :  { %v1039_v23 = vpop.f32.mrb[3].mxu1 }
 0x4bb   :  { %v880_v27 = vadd.f32 %v1037_v20, %v984_v24 }
 0x4bf   :  { %v1057_v25 = vpop.f32.mrb[4].mxu0 }
 0x4c0   :  { %v1058_v26 = vpop.f32.mrb[5].mxu0 }
 0x4c1   :  { %v1059_v28 = vadd.f32 %v1058_v26, %v1057_v25  ;;  %v1060_v29 = vpop.f32.mrb[6].mxu0 }
 0x4c2   :  { %v1061_v30 = vpop.f32.mrb[7].mxu0 }
 0x4c3   :  { %v920_v31 = vadd.f32 %v1059_v28, %v880_v27 }
 0x4c5   :  { %v925_v33 = vmul.f32 %v920_v31, %v920_v31 }
 0x4c7   :  { %931 = vrot.lane.b32.xlu0 %v925_v33, %s1257_s11  ;;  %927 = vrot.lane.b32.xlu1 %v925_v33, %s1258_s13 }
 0x4cb   :  { %935 = vrot.lane.b32.xlu1 %v925_v33, %s1259_s14 }
 0x539   :  { %v928_v22 = vpop.permute.xlu1 %927  ;;  %v932_v34 = vpop.permute.xlu0 %931 }
 0x53a   :  { %v930_v32 = vadd.f32 %v928_v22, %v925_v33 }
 0x53c   :  { %v934_v35 = vadd.f32 %v932_v34, %v930_v32 }
 0x53d   :  { %v936_v36 = vpop.permute.xlu1 %935 }
 0x53e   :  { %v938_v37 = vadd.f32 %v936_v36, %v934_v35 }
 0x540   :  { %1215 = vrsqrt.f32 %v938_v37  ;;  %v946_v38 = vadd.f32 1.0, %v938_v37  ;;  %vm941_vm9 = vcmp.eq.f32.partialorder %v938_v37, inf  ;;  %v944_v41 = vand.u32 2147483648, %v938_v37 }
 0x541   :  { %vm943_vm10 = vcmp.eq.f32.partialorder %v938_v37, 0.0 }
 0x542   :  { %1217 = vrcp.f32 %v946_v38 }
 0x54a   :  { %v1216_v39 = vpop.eup %1215 }
 0x54b   :  { %v940_v40 = vmul.f32 %v1216_v39, %v938_v37 }
 0x54c   :  { %v1218_v42 = vpop.eup %1217 }
 0x54d   :  { %v942_v61 = vsel %vm941_vm9, %v938_v37, %v940_v40 }
 0x54e   :  { %v945_v43 = vsel %vm943_vm10, %v944_v41, %v942_v61 }
 0x54f   :  { %v948_v44 = vmul.f32 %v1218_v42, %v945_v43 }
 0x551   :  { %953 = vrot.lane.b32.xlu1 %v948_v44, %s1252_s26  ;;  %950 = vrot.lane.b32.xlu0 %v948_v44, %s1260_s4  ;;  %s1219_s26 = scalar_lea.vmem %s974_s17, 32 }
 0x552   :  { %p1220_p0 = scmp.ne.s32.totalorder %s974_s17, %s1219_s26  ;;  %p1225_p2 = scmp.lt.s32.totalorder %s1219_s26, %s1219_s26 }
 0x554   :  { %p1226_p3 = por %p1225_p2, %p1224_p1 }
 0x555   :  { %956 = vrot.lane.b32.xlu0 %v948_v44, %s1261_s15 }
 0x556   :  { %p1227_p4 = pnand %p1226_p3, %p1220_p0 }
 0x5c3   :  { %v951_v45 = vpop.permute.xlu0 %950  ;;  %v954_v46 = vpop.permute.xlu1 %953 }
 0x5c4   :  { %v960_v47 = vsel %vm959_vm11, %v948_v44, %v951_v45 }
 0x5c5   :  { %v961_v48 = vsel %vm37_vm0, %v960_v47, %v954_v46 }
 0x5c7   :  { %v957_v49 = vpop.permute.xlu0 %956 }
 0x5c8   :  { %v963_v50 = vsel %vm962_vm12, %v961_v48, %v957_v49 }
 0x5c9   :  { %v964_v51 = vmul.f32 %v963_v50, %v920_v31 }
 0x5cb   :  { %966 = vst.msk [vmem:[#allocation2] sm:$0x3] %vm965_vm13, %v964_v51 }
 0x5cc   :  { %1230 = shalt.err (!%p1227_p4)
}
 0x5cd   :  { %s1231_s20 = scalar_lea.hbm %s1565_s5, 32 }
 0x5ce   :  { %p1232_p5 = scmp.ne.s32.totalorder %s1565_s5, %s1231_s20  ;;  %p1235_p6 = scmp.lt.u32.totalorder %s1231_s20, %s1565_s5 }
 0x5d0   :  { %p1237_p7 = pnand %p1235_p6, %p1232_p5 }
 0x5d2   :  { %1240 = shalt.err (!%p1237_p7)
}
 0x5d3   :  { %976 = dma.vmem_to_hbm [thread:$0]  %s974_s17, 32, %s1565_s5, [#allocation3]  }
 0x5d4   :  { %1241 = dma.done.wait [#allocation3], 32  }
 0x5d5   :  { %1242 = vsyncadd [#allocation3], 4294967264 }
 0x5d6   :  { %980 = vsyncpa [#allocation3], 1 }

// kernel: tpu_custom_call.1
= control target key start
LH: loop header
LB: loop body
LE: loop exit
PB: predicated region body
PF: predicated region fallthrough
CT: control target
= control target key end

     0   :  { %v1243_v1 = vmov 0.0   ;;  %vm37_vm0 = vcmask 130048   ;;  %vm1244_vm1 = vmmov 0   ;;  %s1560_s0 = inlined_call_operand.vmem [shape: bf16[16,16], index: 0, kind: input, shape index: {}]   ;;  %s1561_s1 = inlined_call_operand.vmem [shape: bf16[16,4], index: 1, kind: input, shape index: {}]   ;;  %s1562_s2 = inlined_call_operand.vmem [shape: bf16[512,32], index: 2, kind: input, shape index: {}]   ;;  %s1563_s3 = inlined_call_operand.vmem [shape: f32[8,4], index: 3, kind: input, shape index: {}]   ;;  %s1564_s4 = inlined_call_operand.vmem [shape: f32[1,32], index: 4, kind: input, shape index: {}]   ;;  %s1565_s5 = inlined_call_operand.hbm [shape: f32[2,32], index: 5, kind: output, shape index: {}]  }
   0x1   :  { %v1168_v0 = vld [vmem:[%s1561_s1] sm:$0xff]   ;;  %1063 = vmatprep.subr.bf16.mxu0 %v1243_v1  ;;  %1065 = vmatprep.mubr.msk.bf16.mxu0 %vm1244_vm1, %v1243_v1 }
   0x2   :  { %v1300_v2 = vld [vmem:[%s1560_s0] sm:$0xff]   ;;  %1064 = vmatpush3.bf16.msra.mxu0 %v1168_v0 }
   0x5   :  { %1066 = vmatmul.mubr.msk.bf16.vlgmr.msra.gmra.mrb[0].mxu0 %vm37_vm0, %v1300_v2 }
   0x6   :  { %10 = vsyncpa [#allocation3], 0  ;;  %vm84_vm2 = vcmask 31744   ;;  %v1245_v31 = vmov 1   ;;  %v1246_v32 = vmov 0   ;;  %v119_v36 = vld [vmem:[%s1563_s3] sm:$0xff]  ;;  %v142_v52 = vlaneseq }
   0x7   :  { %1089 = vset.pattern.permute.xlu0 %v1245_v31  ;;  %1090 = vset.pattern.permute.xlu1 %v1246_v32  ;;  %v1247_v41 = vmov 3   ;;  %v1248_v43 = vmov 2   ;;  %v1170_v46 = vld [vmem:[%s1562_s2 + $0x40] sm:$0xff]   ;;  %v1249_v50 = vmov 1983009808   ;;  %v124_v54 = vunpack.c.l.bf16 %v1300_v2  ;;  %s1251_s3 = smov 32  }
   0x8   :  { %v1171_v47 = vld [vmem:[%s1562_s2] sm:$0xff]   ;;  %1019 = vmatprep.subr.bf16.mxu1 %v1170_v46  ;;  %v140_v51 = vunpack.c.l.s4 %v1249_v50  ;;  %v143_v56 = vshrl.u32 %v142_v52, 7  ;;  %v1322_v58 = vunpack.c.h.bf16 %v1300_v2  ;;  %v1250_v59 = vmov 1934713408   ;;  %v1173_v2 = vld [vmem:[%s1562_s2 + $0x8] sm:$0xff]   ;;  %s1252_s26 = smov 16  }
   0x9   :  { %1020 = vmatpush3.bf16.msra.mxu1 %v1171_v47  ;;  %v171_v60 = vunpack.c.l.s4 %v1250_v59  ;;  %v1182_v47 = vld [vmem:[%s1562_s2 + $0x60] sm:$0xff]   ;;  %s1253_s10 = smov 48   ;;  %s1254_s19 = smov 64   ;;  %vm233_vm3 = vcmask 261120   ;;  %vm235_vm4 = vcmask 392192   ;;  %vm237_vm5 = vcmask 523264  }
   0xa   :  { %v141_v55 = vunpack.c.0.s8 %v140_v51  ;;  %s1255_s25 = smov 96   ;;  %s1256_s6 = smov 80   ;;  %vm239_vm6 = vcmask 654336   ;;  %vm241_vm7 = vcmask 785408   ;;  %vm243_vm8 = vcmask 916480  }
   0xb   :  { %s1257_s11 = smov 112   ;;  %s1258_s13 = smov 120   ;;  %vm959_vm11 = vcmask 64512   ;;  %vm962_vm12 = vcmask 195584   ;;  %vm965_vm13 = vcmask 254976  }
   0xc   :  { %v1324_v61 = vsub.s32 %v141_v55, %v143_v56  ;;  %s1259_s14 = smov 104   ;;  %s1261_s15 = smov 24  }
   0xd   :  { %s1262_s16 = smov [#allocation2]  }
   0xe   :  { %s973_s17 = sshll.u32 %s1262_s16, 4  ;;  %s974_s17 = int_to_ptr.vmem [resolvable:$true] %s973_s17 }
   0xf   :  { %p1224_p1 = scmp.lt.s32.totalorder %s974_s17, %s974_s17 }
  0xd8   :  { %v75_v3 = vpop.f32.mrb[0].mxu0 }
  0xd9   :  { %v1067_v4 = vpop.f32.mrb[1].mxu0  ;;  %v82_v5 = vmul.f32 %v75_v3, %v75_v3 }
  0xda   :  { %v78_v6 = vpop.f32.mrb[2].mxu0 }
  0xdb   :  { %v83_v7 = vmul.f32 %v78_v6, %v78_v6  ;;  %v1068_v8 = vpop.f32.mrb[3].mxu0  ;;  %v85_v9 = vsel %vm84_vm2, %v82_v5, 0.0  ;;  %v1172_v5 = vld [vmem:[%s1562_s2 + $0x48] sm:$0xff]  }
  0xdc   :  { %86 = vadd.xlane.f32.xlu0 %v85_v9  ;;  %1021 = vmatprep.subr.bf16.mxu1 %v1172_v5 }
  0xdd   :  { %v88_v10 = vsel %vm84_vm2, %v83_v7, 0.0  ;;  %1022 = vmatpush3.bf16.msra.mxu1 %v1173_v2 }
  0xe0   :  { %89 = vadd.xlane.f32.xlu0 %v88_v10 }
 0x169   :  { %v87_v11 = vpop.xlane.xlu0 %86 }
 0x16a   :  { %v91_v12 = vmax.f32 %v87_v11, 1e-24 }
 0x16c   :  { %1203 = vrsqrt.f32 %v91_v12  ;;  %v1174_v12 = vld [vmem:[%s1562_s2 + $0x50] sm:$0xff]  }
 0x16d   :  { %v90_v13 = vpop.xlane.xlu0 %89  ;;  %1023 = vmatprep.subr.bf16.mxu1 %v1174_v12 }
 0x16e   :  { %v92_v14 = vmax.f32 %v90_v13, 1e-24  ;;  %v1175_v13 = vld [vmem:[%s1562_s2 + $0xc0] sm:$0xff]  }
 0x16f   :  { %1041 = vmatprep.subr.bf16.mxu0 %v1175_v13  ;;  %v1189_v13 = vld [vmem:[%s1562_s2 + $0x98] sm:$0xff]  }
 0x170   :  { %1205 = vrsqrt.f32 %v92_v14  ;;  %v1176_v14 = vld [vmem:[%s1562_s2 + $0x10] sm:$0xff]  }
 0x171   :  { %1024 = vmatpush3.bf16.msra.mxu1 %v1176_v14 }
 0x176   :  { %v1204_v15 = vpop.eup %1203 }
 0x177   :  { %v95_v16 = vmul.f32 %v1204_v15, %v75_v3  ;;  %v172_v3 = vunpack.c.0.s8 %v171_v60 }
 0x179   :  { %v97_v17 = vsel %vm84_vm2, %v95_v16, -inf  ;;  %v1335_v9 = vsub.s32 %v172_v3, %v143_v56  ;;  %v1185_v56 = vld [vmem:[%s1562_s2 + $0x90] sm:$0xff]   ;;  %v1186_v3 = vld [vmem:[%s1562_s2 + $0x68] sm:$0xff]  }
 0x17a   :  { %v1206_v18 = vpop.eup %1205  ;;  %98 = vmax.xlane.f32.xlu1 %v97_v17 }
 0x17b   :  { %v96_v19 = vmul.f32 %v1206_v18, %v78_v6 }
 0x17d   :  { %v100_v20 = vsel %vm84_vm2, %v96_v19, -inf }
 0x17e   :  { %101 = vmax.xlane.f32.xlu1 %v100_v20 }
 0x207   :  { %v99_v21 = vpop.xlane.xlu1 %98 }
 0x208   :  { %v103_v22 = vsub.f32 %v95_v16, %v99_v21 }
 0x20a   :  { %v105_v23 = vmul.f32 1.442695, %v103_v22 }
 0x20b   :  { %v102_v24 = vpop.xlane.xlu1 %101 }
 0x20c   :  { %1207 = vpow2.f32 %v105_v23  ;;  %v104_v25 = vsub.f32 %v96_v19, %v102_v24  ;;  %v1177_v19 = vld [vmem:[%s1562_s2 + $0x80] sm:$0xff]  }
 0x20d   :  { %1042 = vmatpush3.bf16.msra.mxu0 %v1177_v19 }
 0x20e   :  { %v107_v26 = vmul.f32 1.442695, %v104_v25 }
 0x210   :  { %1209 = vpow2.f32 %v107_v26 }
 0x216   :  { %v1208_v27 = vpop.eup %1207 }
 0x217   :  { %v109_v28 = vsel %vm84_vm2, %v1208_v27, 0.0 }
 0x218   :  { %110 = vadd.xlane.f32.xlu0 %v109_v28 }
 0x21a   :  { %v1210_v29 = vpop.eup %1209 }
 0x21b   :  { %v112_v30 = vsel %vm84_vm2, %v1210_v29, 0.0 }
 0x21c   :  { %113 = vadd.xlane.f32.xlu1 %v112_v30  ;;  %v1179_v30 = vld [vmem:[%s1562_s2 + $0xc8] sm:$0xff]  }
 0x21d   :  { %1043 = vmatprep.subr.bf16.mxu0 %v1179_v30 }
 0x2a5   :  { %v111_v33 = vpop.xlane.xlu0 %110 }
 0x2a6   :  { %1211 = vrcp.f32 %v111_v33 }
 0x2a9   :  { %v114_v34 = vpop.xlane.xlu1 %113 }
 0x2aa   :  { %1213 = vrcp.f32 %v114_v34 }
 0x2b0   :  { %v1212_v35 = vpop.eup %1211 }
 0x2b1   :  { %v117_v37 = vmul.f32 %v1212_v35, %v1208_v27 }
 0x2b3   :  { %v120_v38 = vmul.f32 %v119_v36, %v117_v37 }
 0x2b4   :  { %v1214_v40 = vpop.eup %1213 }
 0x2b5   :  { %v122_v39 = vadd.f32 1.0, %v120_v38  ;;  %v118_v42 = vmul.f32 %v1214_v40, %v1210_v29  ;;  %v1178_v29 = vld [vmem:[%s1562_s2 + $0x58] sm:$0xff]  }
 0x2b6   :  { %1025 = vmatprep.subr.bf16.mxu1 %v1178_v29  ;;  %v1193_v29 = vld [vmem:[%s1562_s2 + $0xa0] sm:$0xff]  }
 0x2b7   :  { %128 = vperm.xlu1 %1090, %v122_v39   ;;  %246 = vperm.xlu0 %1089, %v122_v39   ;;  %v121_v44 = vmul.f32 %v119_v36, %v118_v42  ;;  %v1181_v36 = vld [vmem:[%s1562_s2 + $0x88] sm:$0xff]  }
 0x2b8   :  { %1044 = vmatpush3.bf16.msra.mxu0 %v1181_v36  ;;  %v1194_v36 = vld [vmem:[%s1562_s2 + $0x78] sm:$0xff]  }
 0x2b9   :  { %v123_v45 = vadd.f32 1.0, %v121_v44 }
 0x2bb   :  { %1091 = vset.pattern.permute.xlu1 %v1247_v41  ;;  %1167 = vset.pattern.permute.xlu0 %v1247_v41 }
 0x2bc   :  { %468 = vperm.xlu1 %1091, %v122_v39  }
 0x2c0   :  { %1092 = vset.pattern.permute.xlu1 %v1248_v43 }
 0x2c1   :  { %357 = vperm.xlu1 %1092, %v122_v39  }
 0x2c5   :  { %1093 = vset.pattern.permute.xlu1 %v1245_v31  ;;  %v1180_v31 = vld [vmem:[%s1562_s2 + $0x18] sm:$0xff]  }
 0x2c6   :  { %250 = vperm.xlu1 %1093, %v123_v45   ;;  %1026 = vmatpush3.bf16.msra.mxu1 %v1180_v31 }
 0x2c7   :  { %1027 = vmatprep.subr.bf16.mxu1 %v1182_v47 }
 0x2ca   :  { %1094 = vset.pattern.permute.xlu1 %v1246_v32 }
 0x2cb   :  { %133 = vperm.xlu1 %1094, %v123_v45  }
 0x2cf   :  { %1095 = vset.pattern.permute.xlu1 %v1247_v41 }
 0x2d0   :  { %472 = vperm.xlu1 %1095, %v123_v45  }
 0x2d4   :  { %1096 = vset.pattern.permute.xlu1 %v1248_v43 }
 0x2d5   :  { %361 = vperm.xlu1 %1096, %v123_v45  }
 0x336   :  { %v129_v48 = vpop.permute.xlu1 %128  ;;  %v247_v57 = vpop.permute.xlu0 %246 }
 0x337   :  { %v253_v62 = vmul.f32 %v247_v57, %v124_v54  ;;  %v136_v6 = vmul.f32 %v129_v48, %v124_v54  ;;  %v1183_v48 = vld [vmem:[%s1562_s2 + $0xd0] sm:$0xff]  }
 0x338   :  { %1045 = vmatprep.subr.bf16.mxu0 %v1183_v48 }
 0x339   :  { %v262_v7 = vrot.slane %v253_v62, %v1324_v61  ;;  %v145_v15 = vrot.slane %v136_v6, %v1324_v61  ;;  %v138_v20 = vcombine.high %v136_v6, %v1243_v1  ;;  %v255_v26 = vcombine.high %v253_v62, %v1243_v1  ;;  %1046 = vmatpush3.bf16.msra.mxu0 %v1185_v56 }
 0x33b   :  { %v469_v49 = vpop.permute.xlu1 %468  ;;  %v152_v37 = vrot.slane %v138_v20, %v1324_v61  ;;  %v269_v44 = vrot.slane %v255_v26, %v1324_v61  ;;  %v1190_v20 = vld [vmem:[%s1562_s2 + $0x70] sm:$0xff]  }
 0x33c   :  { %v475_v32 = vmul.f32 %v469_v49, %v124_v54 }
 0x33e   :  { %v484_v49 = vrot.slane %v475_v32, %v1324_v61 }
 0x340   :  { %v358_v53 = vpop.permute.xlu1 %357 }
 0x341   :  { %v364_v38 = vmul.f32 %v358_v53, %v124_v54  ;;  %v1184_v53 = vld [vmem:[%s1562_s2 + $0x20] sm:$0xff]  }
 0x342   :  { %1028 = vmatpush3.bf16.msra.mxu1 %v1184_v53 }
 0x343   :  { %v373_v54 = vrot.slane %v364_v38, %v1324_v61  ;;  %v366_v62 = vcombine.high %v364_v38, %v1243_v1  ;;  %1029 = vmatprep.subr.bf16.mxu1 %v1186_v3 }
 0x345   :  { %v251_v63 = vpop.permute.xlu1 %250  ;;  %v380_v30 = vrot.slane %v366_v62, %v1324_v61  ;;  %v1201_v62 = vld [vmem:[%s1562_s2 + $0xb8] sm:$0xff]  }
 0x346   :  { %v254_v0 = vmul.f32 %v251_v63, %v1322_v58 }
 0x348   :  { %v277_v4 = vrot.slane %v254_v0, %v1324_v61  ;;  %v270_v21 = vcombine.high %v254_v0, %v1243_v1 }
 0x34a   :  { %v134_v8 = vpop.permute.xlu1 %133  ;;  %v285_v10 = vcombine.low %v262_v7, %v277_v4  ;;  %v286_v16 = vcombine.high %v262_v7, %v277_v4  ;;  %v1382_v39 = vrot.slane %v270_v21, %v1324_v61  ;;  %v1187_v4 = vld [vmem:[%s1562_s2 + $0xd8] sm:$0xff]   ;;  %v1191_v21 = vld [vmem:[%s1562_s2 + $0xe0] sm:$0xff]  }
 0x34b   :  { %v137_v11 = vmul.f32 %v134_v8, %v1322_v58  ;;  %v1188_v8 = vld [vmem:[%s1562_s2 + $0x28] sm:$0xff]   ;;  %1047 = vmatprep.subr.bf16.mxu0 %v1187_v4 }
 0x34c   :  { %v1356_v22 = vrot.slane %v285_v10, %v1335_v9  ;;  %v300_v35 = vrot.slane %v286_v16, %v1335_v9  ;;  %v301_v55 = vcombine.low %v269_v44, %v1382_v39  ;;  %v302_v10 = vcombine.high %v269_v44, %v1382_v39  ;;  %1030 = vmatpush3.bf16.msra.mxu1 %v1188_v8 }
 0x34d   :  { %v153_v17 = vcombine.high %v137_v11, %v1243_v1  ;;  %v160_v18 = vrot.slane %v137_v11, %v1324_v61  ;;  %1048 = vmatpush3.bf16.msra.mxu0 %v1189_v13  ;;  %1031 = vmatprep.subr.bf16.mxu1 %v1190_v20 }
 0x34e   :  { %v317_v43 = vcombine.high %v1356_v22, %v1243_v1  ;;  %v318_v60 = vcombine.high %v300_v35, %v1243_v1  ;;  %v309_v12 = vrot.slane %v301_v55, %v1335_v9  ;;  %1049 = vmatprep.subr.bf16.mxu0 %v1191_v21 }
 0x34f   :  { %v168_v23 = vcombine.low %v145_v15, %v160_v18  ;;  %v169_v24 = vcombine.high %v145_v15, %v160_v18  ;;  %v473_v25 = vpop.permute.xlu1 %472  ;;  %v1360_v27 = vrot.slane %v153_v17, %v1324_v61  ;;  %v477_v18 = vcombine.high %v475_v32, %v1243_v1 }
 0x350   :  { %v476_v28 = vmul.f32 %v473_v25, %v1322_v58 }
 0x351   :  { %v1373_v33 = vrot.slane %v168_v23, %v1335_v9  ;;  %v183_v34 = vrot.slane %v169_v24, %v1335_v9  ;;  %v184_v45 = vcombine.low %v152_v37, %v1360_v27  ;;  %v185_v63 = vcombine.high %v152_v37, %v1360_v27  ;;  %v1192_v27 = vld [vmem:[%s1562_s2 + $0x30] sm:$0xff]   ;;  %v1195_v37 = vld [vmem:[%s1562_s2 + $0xe8] sm:$0xff]   ;;  %1050 = vmatpush3.bf16.msra.mxu0 %v1193_v29 }
 0x352   :  { %v499_v40 = vrot.slane %v476_v28, %v1324_v61  ;;  %v492_v11 = vcombine.high %v476_v28, %v1243_v1  ;;  %v316_v28 = vrot.slane %v302_v10, %v1335_v9  ;;  %1032 = vmatpush3.bf16.msra.mxu1 %v1192_v27  ;;  %1051 = vmatprep.subr.bf16.mxu0 %v1195_v37 }
 0x353   :  { %v1097_v41 = vpack.i.bf16 %v183_v34, %v300_v35  ;;  %v200_v42 = vcombine.high %v1373_v33, %v1243_v1  ;;  %v201_v52 = vcombine.high %v183_v34, %v1243_v1  ;;  %v192_v0 = vrot.slane %v184_v45, %v1335_v9  ;;  %1033 = vmatprep.subr.bf16.mxu1 %v1194_v36 }
 0x354   :  { %v362_v46 = vpop.permute.xlu1 %361  ;;  %v507_v57 = vcombine.low %v484_v49, %v499_v40  ;;  %v199_v19 = vrot.slane %v185_v63, %v1335_v9  ;;  %v506_v31 = vrot.slane %v492_v11, %v1324_v61  ;;  %v491_v34 = vrot.slane %v477_v18, %v1324_v61 }
 0x355   :  { %v365_v50 = vmul.f32 %v362_v46, %v1322_v58  ;;  %1098 = vrot.lane.b32.xlu0 %v1097_v41, %s1251_s3  ;;  %v1107_v51 = vpack.i.bf16 %v200_v42, %v317_v43  ;;  %v508_v58 = vcombine.high %v484_v49, %v499_v40  ;;  %v1112_v7 = vpack.i.bf16 %v201_v52, %v318_v60  ;;  %v1197_v42 = vld [vmem:[%s1562_s2 + $0xa8] sm:$0xff]   ;;  %v1199_v52 = vld [vmem:[%s1562_s2 + $0xb0] sm:$0xff]   ;;  %v1200_v60 = vld [vmem:[%s1562_s2 + $0xf8] sm:$0xff]  }
 0x356   :  { %v1432_v14 = vrot.slane %v507_v57, %v1335_v9  ;;  %v1122_v25 = vpack.i.bf16 %v192_v0, %v309_v12  ;;  %v1132_v35 = vpack.i.bf16 %v199_v19, %v316_v28  ;;  %v202_v41 = vcombine.high %v192_v0, %v1243_v1  ;;  %1052 = vmatpush3.bf16.msra.mxu0 %v1197_v42 }
 0x357   :  { %v388_v59 = vrot.slane %v365_v50, %v1324_v61  ;;  %1108 = vrot.lane.b32.xlu1 %v1107_v51, %s1252_s26  ;;  %v381_v5 = vcombine.high %v365_v50, %v1243_v1  ;;  %v522_v17 = vrot.slane %v508_v58, %v1335_v9  ;;  %v523_v43 = vcombine.low %v491_v34, %v506_v31  ;;  %v1198_v51 = vld [vmem:[%s1562_s2 + $0xf0] sm:$0xff]  }
 0x358   :  { %v539_v32 = vcombine.high %v1432_v14, %v1243_v1  ;;  %v319_v45 = vcombine.high %v309_v12, %v1243_v1  ;;  %v203_v46 = vcombine.high %v199_v19, %v1243_v1  ;;  %v524_v53 = vcombine.high %v491_v34, %v506_v31  ;;  %1053 = vmatprep.subr.bf16.mxu0 %v1198_v51 }
 0x359   :  { %v396_v2 = vcombine.low %v373_v54, %v388_v59  ;;  %v397_v6 = vcombine.high %v373_v54, %v388_v59  ;;  %v395_v23 = vrot.slane %v381_v5, %v1324_v61  ;;  %v1196_v61 = vld [vmem:[%s1562_s2 + $0x38] sm:$0xff]   ;;  %v540_v44 = vcombine.high %v522_v17, %v1243_v1 }
 0x35a   :  { %v1142_v49 = vpack.i.bf16 %v202_v41, %v319_v45  ;;  %1034 = vmatpush3.bf16.msra.mxu1 %v1196_v61  ;;  %v531_v54 = vrot.slane %v523_v43, %v1335_v9  ;;  %v320_v55 = vcombine.high %v316_v28, %v1243_v1  ;;  %1054 = vmatpush3.bf16.msra.mxu0 %v1199_v52 }
 0x35b   :  { %v1435_v15 = vrot.slane %v396_v2, %v1335_v9  ;;  %1113 = vrot.lane.b32.xlu1 %v1112_v7, %s1253_s10  ;;  %v411_v16 = vrot.slane %v397_v6, %v1335_v9  ;;  %v412_v38 = vcombine.low %v380_v30, %v395_v23  ;;  %v413_v47 = vcombine.high %v380_v30, %v395_v23 }
 0x35c   :  { %v1147_v57 = vpack.i.bf16 %v203_v46, %v320_v55  ;;  %v541_v63 = vcombine.high %v531_v54, %v1243_v1  ;;  %v538_v0 = vrot.slane %v524_v53, %v1335_v9  ;;  %1055 = vmatprep.subr.bf16.mxu0 %v1200_v60 }
 0x35d   :  { %v1102_v24 = vpack.i.bf16 %v411_v16, %v522_v17  ;;  %v428_v26 = vcombine.high %v1435_v15, %v1243_v1  ;;  %v429_v40 = vcombine.high %v411_v16, %v1243_v1  ;;  %v420_v50 = vrot.slane %v412_v38, %v1335_v9 }
 0x35e   :  { %v427_v59 = vrot.slane %v413_v47, %v1335_v9  ;;  %1056 = vmatpush3.bf16.msra.mxu0 %v1201_v62  ;;  %v542_v2 = vcombine.high %v538_v0, %v1243_v1 }
 0x35f   :  { %1103 = vrot.lane.b32.xlu0 %v1102_v24, %s1251_s3  ;;  %1123 = vrot.lane.b32.xlu1 %v1122_v25, %s1254_s19  ;;  %v1117_v39 = vpack.i.bf16 %v428_v26, %v539_v32  ;;  %v1127_v48 = vpack.i.bf16 %v429_v40, %v540_v44  ;;  %v1137_v56 = vpack.i.bf16 %v420_v50, %v531_v54 }
 0x360   :  { %v430_v58 = vcombine.high %v420_v50, %v1243_v1  ;;  %v1152_v4 = vpack.i.bf16 %v427_v59, %v538_v0  ;;  %v431_v5 = vcombine.high %v427_v59, %v1243_v1 }
 0x362   :  { %v1157_v3 = vpack.i.bf16 %v430_v58, %v541_v63  ;;  %v1162_v6 = vpack.i.bf16 %v431_v5, %v542_v2 }
 0x363   :  { %1118 = vrot.lane.b32.xlu0 %v1117_v39, %s1252_s26  ;;  %1133 = vrot.lane.b32.xlu1 %v1132_v35, %s1255_s25 }
 0x367   :  { %1128 = vrot.lane.b32.xlu0 %v1127_v48, %s1253_s10  ;;  %1143 = vrot.lane.b32.xlu1 %v1142_v49, %s1256_s6 }
 0x36b   :  { %1138 = vrot.lane.b32.xlu0 %v1137_v56, %s1254_s19  ;;  %1148 = vrot.lane.b32.xlu1 %v1147_v57, %s1257_s11 }
 0x36f   :  { %1158 = vrot.lane.b32.xlu0 %v1157_v3, %s1256_s6  ;;  %1153 = vrot.lane.b32.xlu1 %v1152_v4, %s1255_s25 }
 0x373   :  { %1163 = vrot.lane.b32.xlu0 %v1162_v6, %s1257_s11 }
 0x3c7   :  { %v1099_v8 = vpop.permute.xlu0 %1098 }
 0x3c8   :  { %v1101_v21 = vunpack.i.h.bf16 %v1099_v8  ;;  %v1100_v23 = vunpack.i.l.bf16 %v1099_v8 }
 0x3c9   :  { %v1109_v7 = vpop.permute.xlu1 %1108 }
 0x3ca   :  { %v1111_v9 = vunpack.i.h.bf16 %v1109_v7  ;;  %v1110_v13 = vunpack.i.l.bf16 %v1109_v7 }
 0x3cc   :  { %v232_v18 = vsel %vm37_vm0, %v1373_v33, %v1111_v9  ;;  %v349_v1 = vsel %vm37_vm0, %v1356_v22, %v1110_v13 }
 0x3cd   :  { %v1114_v10 = vpop.permute.xlu1 %1113  ;;  %v234_v26 = vsel %vm233_vm3, %v232_v18, %v1101_v21  ;;  %v350_v27 = vsel %vm233_vm3, %v349_v1, %v1100_v23 }
 0x3ce   :  { %v1116_v19 = vunpack.i.h.bf16 %v1114_v10  ;;  %v1115_v20 = vunpack.i.l.bf16 %v1114_v10 }
 0x3d0   :  { %v236_v33 = vsel %vm235_vm4, %v234_v26, %v1116_v19  ;;  %v351_v22 = vsel %vm235_vm4, %v350_v27, %v1115_v20 }
 0x3d1   :  { %v1104_v11 = vpop.permute.xlu0 %1103  ;;  %v1124_v12 = vpop.permute.xlu1 %1123 }
 0x3d2   :  { %v1126_v24 = vunpack.i.h.bf16 %v1124_v12  ;;  %v1125_v25 = vunpack.i.l.bf16 %v1124_v12  ;;  %v1106_v37 = vunpack.i.h.bf16 %v1104_v11  ;;  %v1105_v38 = vunpack.i.l.bf16 %v1104_v11 }
 0x3d4   :  { %v238_v35 = vsel %vm237_vm5, %v236_v33, %v1126_v24  ;;  %v352_v36 = vsel %vm237_vm5, %v351_v22, %v1125_v25  ;;  %v984_v24 = vld [vmem:[%s1564_s4] ss:$0 sm:$0xff]  ;;  %s1260_s4 = smov 8  }
 0x3d5   :  { %v1119_v16 = vpop.permute.xlu0 %1118  ;;  %v1134_v17 = vpop.permute.xlu1 %1133 }
 0x3d6   :  { %v1121_v28 = vunpack.i.h.bf16 %v1119_v16  ;;  %v1120_v29 = vunpack.i.l.bf16 %v1119_v16  ;;  %v1136_v42 = vunpack.i.h.bf16 %v1134_v17  ;;  %v1135_v43 = vunpack.i.l.bf16 %v1134_v17 }
 0x3d8   :  { %v460_v41 = vsel %vm37_vm0, %v1435_v15, %v1121_v28  ;;  %v571_v61 = vsel %vm37_vm0, %v1432_v14, %v1120_v29 }
 0x3d9   :  { %v1129_v30 = vpop.permute.xlu0 %1128  ;;  %v1144_v31 = vpop.permute.xlu1 %1143  ;;  %v461_v14 = vsel %vm233_vm3, %v460_v41, %v1106_v37  ;;  %v572_v55 = vsel %vm233_vm3, %v571_v61, %v1105_v38 }
 0x3da   :  { %v1146_v32 = vunpack.i.h.bf16 %v1144_v31  ;;  %v1145_v34 = vunpack.i.l.bf16 %v1144_v31  ;;  %v1131_v46 = vunpack.i.h.bf16 %v1129_v30  ;;  %v1130_v47 = vunpack.i.l.bf16 %v1129_v30 }
 0x3dc   :  { %v240_v39 = vsel %vm239_vm6, %v238_v35, %v1146_v32  ;;  %v353_v40 = vsel %vm239_vm6, %v352_v36, %v1145_v34  ;;  %v462_v60 = vsel %vm235_vm4, %v461_v14, %v1131_v46  ;;  %v573_v62 = vsel %vm235_vm4, %v572_v55, %v1130_v47 }
 0x3dd   :  { %v1139_v44 = vpop.permute.xlu0 %1138  ;;  %v1149_v45 = vpop.permute.xlu1 %1148  ;;  %v354_v52 = vsel %vm241_vm7, %v353_v40, %v1135_v43  ;;  %v242_v53 = vsel %vm241_vm7, %v240_v39, %v1136_v42 }
 0x3de   :  { %v1151_v48 = vunpack.i.h.bf16 %v1149_v45  ;;  %v1150_v49 = vunpack.i.l.bf16 %v1149_v45  ;;  %v1141_v50 = vunpack.i.h.bf16 %v1139_v44  ;;  %v1140_v51 = vunpack.i.l.bf16 %v1139_v44 }
 0x3e0   :  { %v355_v54 = vsel %vm243_vm8, %v354_v52, %v1150_v49  ;;  %v244_v15 = vsel %vm243_vm8, %v242_v53, %v1151_v48  ;;  %v463_v3 = vsel %vm237_vm5, %v462_v60, %v1141_v50  ;;  %v574_v4 = vsel %vm237_vm5, %v573_v62, %v1140_v51 }
 0x3e1   :  { %v1159_v56 = vpop.permute.xlu0 %1158  ;;  %v1154_v57 = vpop.permute.xlu1 %1153  ;;  %v579_v58 = vpack.c.bf16 %v355_v54, %v355_v54  ;;  %v578_v59 = vpack.c.bf16 %v244_v15, %v244_v15 }
 0x3e2   :  { %v1161_v63 = vunpack.i.h.bf16 %v1159_v56  ;;  %v1160_v0 = vunpack.i.l.bf16 %v1159_v56  ;;  %v1156_v5 = vunpack.i.h.bf16 %v1154_v57  ;;  %v1155_v2 = vunpack.i.l.bf16 %v1154_v57 }
 0x3e3   :  { %877 = vmatprep.mubr.bf16.mxu1 %v579_v58 }
 0x3e4   :  { %v464_v6 = vsel %vm239_vm6, %v463_v3, %v1161_v63  ;;  %v575_v7 = vsel %vm239_vm6, %v574_v4, %v1160_v0  ;;  %878 = vmatmul.mubr.bf16.vlgmr.msra.gmra.mrb[0].mxu1 %v578_v59 }
 0x3e5   :  { %v1164_v8 = vpop.permute.xlu0 %1163  ;;  %v465_v12 = vsel %vm241_vm7, %v464_v6, %v1156_v5  ;;  %v576_v9 = vsel %vm241_vm7, %v575_v7, %v1155_v2 }
 0x3e6   :  { %v1166_v10 = vunpack.i.h.bf16 %v1164_v8  ;;  %v1165_v11 = vunpack.i.l.bf16 %v1164_v8 }
 0x3e8   :  { %v466_v13 = vsel %vm243_vm8, %v465_v12, %v1166_v10  ;;  %v577_v16 = vsel %vm243_vm8, %v576_v9, %v1165_v11 }
 0x3e9   :  { %v580_v17 = vpack.c.bf16 %v466_v13, %v466_v13  ;;  %v581_v18 = vpack.c.bf16 %v577_v16, %v577_v16 }
 0x3eb   :  { %917 = vmatprep.mubr.bf16.mxu0 %v581_v18 }
 0x3ec   :  { %918 = vmatmul.mubr.bf16.vlgmr.msra.gmra.mrb[4].mxu0 %v580_v17 }
 0x4b7   :  { %v1035_v1 = vpop.f32.mrb[0].mxu1 }
 0x4b8   :  { %v1036_v19 = vpop.f32.mrb[1].mxu1 }
 0x4b9   :  { %v1037_v20 = vadd.f32 %v1036_v19, %v1035_v1  ;;  %v1038_v21 = vpop.f32.mrb[2].mxu1 }
 0x4ba   :  { %v1039_v23 = vpop.f32.mrb[3].mxu1 }
 0x4bb   :  { %v880_v27 = vadd.f32 %v1037_v20, %v984_v24 }
 0x4bf   :  { %v1057_v25 = vpop.f32.mrb[4].mxu0 }
 0x4c0   :  { %v1058_v26 = vpop.f32.mrb[5].mxu0 }
 0x4c1   :  { %v1059_v28 = vadd.f32 %v1058_v26, %v1057_v25  ;;  %v1060_v29 = vpop.f32.mrb[6].mxu0 }
 0x4c2   :  { %v1061_v30 = vpop.f32.mrb[7].mxu0 }
 0x4c3   :  { %v920_v31 = vadd.f32 %v1059_v28, %v880_v27 }
 0x4c5   :  { %v925_v33 = vmul.f32 %v920_v31, %v920_v31 }
 0x4c7   :  { %931 = vrot.lane.b32.xlu0 %v925_v33, %s1257_s11  ;;  %927 = vrot.lane.b32.xlu1 %v925_v33, %s1258_s13 }
 0x4cb   :  { %935 = vrot.lane.b32.xlu1 %v925_v33, %s1259_s14 }
 0x539   :  { %v928_v22 = vpop.permute.xlu1 %927  ;;  %v932_v34 = vpop.permute.xlu0 %931 }
 0x53a   :  { %v930_v32 = vadd.f32 %v928_v22, %v925_v33 }
 0x53c   :  { %v934_v35 = vadd.f32 %v932_v34, %v930_v32 }
 0x53d   :  { %v936_v36 = vpop.permute.xlu1 %935 }
 0x53e   :  { %v938_v37 = vadd.f32 %v936_v36, %v934_v35 }
 0x540   :  { %1215 = vrsqrt.f32 %v938_v37  ;;  %v946_v38 = vadd.f32 1.0, %v938_v37  ;;  %vm941_vm9 = vcmp.eq.f32.partialorder %v938_v37, inf  ;;  %v944_v41 = vand.u32 2147483648, %v938_v37 }
 0x541   :  { %vm943_vm10 = vcmp.eq.f32.partialorder %v938_v37, 0.0 }
 0x542   :  { %1217 = vrcp.f32 %v946_v38 }
 0x54a   :  { %v1216_v39 = vpop.eup %1215 }
 0x54b   :  { %v940_v40 = vmul.f32 %v1216_v39, %v938_v37 }
 0x54c   :  { %v1218_v42 = vpop.eup %1217 }
 0x54d   :  { %v942_v61 = vsel %vm941_vm9, %v938_v37, %v940_v40 }
 0x54e   :  { %v945_v43 = vsel %vm943_vm10, %v944_v41, %v942_v61 }
 0x54f   :  { %v948_v44 = vmul.f32 %v1218_v42, %v945_v43 }
 0x551   :  { %953 = vrot.lane.b32.xlu1 %v948_v44, %s1252_s26  ;;  %950 = vrot.lane.b32.xlu0 %v948_v44, %s1260_s4  ;;  %s1219_s26 = scalar_lea.vmem %s974_s17, 32 }
 0x552   :  { %p1220_p0 = scmp.ne.s32.totalorder %s974_s17, %s1219_s26  ;;  %p1225_p2 = scmp.lt.s32.totalorder %s1219_s26, %s1219_s26 }
 0x554   :  { %p1226_p3 = por %p1225_p2, %p1224_p1 }
 0x555   :  { %956 = vrot.lane.b32.xlu0 %v948_v44, %s1261_s15 }
 0x556   :  { %p1227_p4 = pnand %p1226_p3, %p1220_p0 }
 0x5c3   :  { %v951_v45 = vpop.permute.xlu0 %950  ;;  %v954_v46 = vpop.permute.xlu1 %953 }
 0x5c4   :  { %v960_v47 = vsel %vm959_vm11, %v948_v44, %v951_v45 }
 0x5c5   :  { %v961_v48 = vsel %vm37_vm0, %v960_v47, %v954_v46 }
 0x5c7   :  { %v957_v49 = vpop.permute.xlu0 %956 }
 0x5c8   :  { %v963_v50 = vsel %vm962_vm12, %v961_v48, %v957_v49 }
 0x5c9   :  { %v964_v51 = vmul.f32 %v963_v50, %v920_v31 }
 0x5cb   :  { %966 = vst.msk [vmem:[#allocation2] sm:$0x3] %vm965_vm13, %v964_v51 }
 0x5cc   :  { %1230 = shalt.err (!%p1227_p4)
}
 0x5cd   :  { %s1231_s20 = scalar_lea.hbm %s1565_s5, 32 }
 0x5ce   :  { %p1232_p5 = scmp.ne.s32.totalorder %s1565_s5, %s1231_s20  ;;  %p1235_p6 = scmp.lt.u32.totalorder %s1231_s20, %s1565_s5 }
 0x5d0   :  { %p1237_p7 = pnand %p1235_p6, %p1232_p5 }
 0x5d2   :  { %1240 = shalt.err (!%p1237_p7)
}
 0x5d3   :  { %976 = dma.vmem_to_hbm [thread:$0]  %s974_s17, 32, %s1565_s5, [#allocation3]  }
 0x5d4   :  { %1241 = dma.done.wait [#allocation3], 32  }
 0x5d5   :  { %1242 = vsyncadd [#allocation3], 4294967264 }
 0x5d6   :  { %980 = vsyncpa [#allocation3], 1 }

</bundles_post_ra>
